<compile_context>
chip_gen: v6e
topology: v6e:2x2x1
jax: 0.10.0
libtpu: 0.0.40
codegen_flags: <defaults>
</compile_context>

<pallas_src>
import jax
import jax.numpy as jnp
from jax.experimental import pallas as pl
from jax.experimental.pallas import tpu as pltpu

# ----------------------------- model hyper-parameters (small) -----------------------
N = 2          # batch
CIN = 4        # in_channels
L = 68         # input sequence length
CLASSES = 10

K_STEM = 15
STRIDE_STEM = 2
PAD_STEM = 7
C_STEM = 128   # stem conv out channels
CH = 128       # bottleneck hidden channels
COUT = 256     # bottleneck out channels
BN_EPS = 1e-5

L1 = (L + 2 * PAD_STEM - K_STEM) // STRIDE_STEM + 1   # 34 (after stem conv)
L2 = (L1 - 3) // 2 + 1                                # 16 (after MaxPool1d(3,2))
M = N * L2                                            # batch folded into rows: 32
KC = K_STEM * CIN                                     # 60
KCP = 128                                             # lane-padded contraction dim
OUTP = 128                                            # lane-padded class dim

# ---- slab layouts (row offsets; all multiples of 128 so loads stay tile-aligned) ----
# W128 slab (cols = 128, bf16)
OFF_WSTEM = 0
OFF_WB1 = 128
OFF_WA2 = 512
OFF_WB2 = 768
OFF_WA3 = 1152
OFF_WB3 = 1408
OFF_WL = 1792
W128_ROWS = 2048
# W256 slab (cols = 256, bf16)
OFF_WC1, OFF_WC2, OFF_WC3 = 0, 128, 256
W256_ROWS = 384
# W384 slab (cols = 384, bf16): wa1 (128,128) ++ wr1 (128,256) fused.
W384_ROWS = 128
# bias slab rows (cols = 256, f32)
ROW_BSTEM, ROW_BA1, ROW_BR1, ROW_BB1, ROW_BC1 = 0, 1, 2, 3, 4
ROW_BA2, ROW_BB2, ROW_BC2 = 5, 6, 7
ROW_BA3, ROW_BB3, ROW_BC3 = 8, 9, 10
ROW_BL = 11
B_ROWS = 12


# ------------------------------------ fused kernel -----------------------------------
def fused_kernel(xs_ref, w128_ref, w256_ref, w384_ref, b_ref, o_ref):
    f32 = jnp.float32
    bf16 = jnp.bfloat16

    def bias(row, width):
        return b_ref[row:row + 1, 0:width]                       # (1, width) f32

    # ---- stem: Conv1d(CIN,128,k=15,s=2,p=7) as im2col matmul, fused MaxPool1d(3,2) ----
    # xs holds the im2col rows for the 3 pool taps stacked along M: (3*M, KCP) bf16.
    w_stem = w128_ref[OFF_WSTEM:OFF_WSTEM + KCP, :]
    y = jnp.dot(xs_ref[...], w_stem, preferred_element_type=f32)  # (3*M, 128)
    h = jnp.maximum(jnp.maximum(y[0:M], y[M:2 * M]), y[2 * M:3 * M]) + bias(ROW_BSTEM, C_STEM)

    # Row masks for the +/-1 shifts: zero the shifted-in row at batch boundaries.
    pos = jax.lax.broadcasted_iota(jnp.int32, (M, CH), 0) % L2
    keep_prev = pos > 0
    keep_next = pos < (L2 - 1)

    def shift3(a):
        # a[r-1] / a[r+1] within each batch (zero padding) via XLU rolls + VPU masks.
        a_prev = jnp.where(keep_prev, pltpu.roll(a, 1, axis=0), 0.0)
        a_next = jnp.where(keep_next, pltpu.roll(a, M - 1, axis=0), 0.0)   # roll by -1
        return jnp.concatenate([a_prev, a, a_next], axis=-1)              # (M, 3*CH)

    def bottleneck_tail(a3, wb, bb, wc, bc, res):
        # single K=384 contraction (fills the 256-deep MXU on v6e/v7x)
        b = jnp.maximum(jnp.dot(a3.astype(bf16), wb, preferred_element_type=f32) + bb, 0.0)
        c = jnp.maximum(jnp.dot(b.astype(bf16), wc, preferred_element_type=f32) + bc, 0.0)
        return c + res

    # ---- bottleneck 1: in(128) != out(256); 1x1 residual fused into the wa matmul ----
    ar = jnp.dot(h.astype(bf16), w384_ref[...], preferred_element_type=f32)  # (M, 384)
    a1 = jnp.maximum(ar[:, 0:CH] + bias(ROW_BA1, CH), 0.0)
    res1 = ar[:, CH:CH + COUT] + bias(ROW_BR1, COUT)
    h = bottleneck_tail(shift3(a1),
                        w128_ref[OFF_WB1:OFF_WB1 + 3 * CH, :], bias(ROW_BB1, CH),
                        w256_ref[OFF_WC1:OFF_WC1 + CH, :], bias(ROW_BC1, COUT),
                        res1)

    # ---- bottlenecks 2, 3: identity residual (plain add) ----
    def bottleneck_id(x, wa_off, ba_row, wb_off, bb_row, wc_off, bc_row):
        a = jnp.maximum(
            jnp.dot(x.astype(bf16), w128_ref[wa_off:wa_off + COUT, :],
                    preferred_element_type=f32) + bias(ba_row, CH), 0.0)
        return bottleneck_tail(shift3(a),
                               w128_ref[wb_off:wb_off + 3 * CH, :], bias(bb_row, CH),
                               w256_ref[wc_off:wc_off + CH, :], bias(bc_row, COUT),
                               x)

    h = bottleneck_id(h, OFF_WA2, ROW_BA2, OFF_WB2, ROW_BB2, OFF_WC2, ROW_BC2)
    h = bottleneck_id(h, OFF_WA3, ROW_BA3, OFF_WB3, ROW_BB3, OFF_WC3, ROW_BC3)

    # ---- head: AdaptiveAvgPool1d(1) (sublane mean) -> Linear -> Softmax ----
    feats = jnp.mean(h.reshape(N, L2, COUT), axis=1)                          # (N, COUT)
    logits = jnp.dot(feats.astype(bf16), w128_ref[OFF_WL:OFF_WL + COUT, :],
                     preferred_element_type=f32) + bias(ROW_BL, OUTP)         # (N, 128)
    # pad lanes carry bias -1e30 -> exp underflows to 0, softmax over real classes only
    mx = jnp.max(logits, axis=-1, keepdims=True)
    e = jnp.exp(logits - mx)
    o_ref[...] = e / jnp.sum(e, axis=-1, keepdims=True)


# --------------------------------- pallas_call wrapper --------------------------------
def _full_spec(shape):
    zeros = (0,) * len(shape)
    return pl.BlockSpec(shape, lambda i, _z=zeros: _z)


def cnn1d_forward(x_ncl, params):
    x_stem = prepare_stem_input(x_ncl)
    w128, w256, w384, bslab = pack_params(params)
    args = (x_stem, w128, w256, w384, bslab)
    in_specs = [_full_spec(tuple(a.shape)) for a in args]

    flops = 2 * (
        3 * M * KCP * C_STEM                 # stem
        + M * C_STEM * (CH + COUT)           # bottleneck-1 fused wa+res
        + 3 * M * (3 * CH) * CH              # 3x wb (K=384)
        + 3 * M * CH * COUT                  # 3x wc
        + 2 * M * COUT * CH                  # wa of bottlenecks 2,3
        + N * COUT * OUTP                    # classifier (lane-padded)
    )
    bytes_accessed = sum(int(a.size) * a.dtype.itemsize for a in args) + N * OUTP * 4

    # NOTE(v7x): grid=(1,) uses a single TensorCore; at N=2 (M=16 rows/core) splitting
    # is not worth the per-core overhead — revisit with a "parallel" batch axis if N grows.
    out_full = pl.pallas_call(
        fused_kernel,
        out_shape=jax.ShapeDtypeStruct((N, OUTP), jnp.float32),
        grid_spec=pltpu.PrefetchScalarGridSpec(
            num_scalar_prefetch=0,
            grid=(1,),
            in_specs=in_specs,
            out_specs=pl.BlockSpec((N, OUTP), lambda i: (0, 0)),
        ),
        compiler_params=pltpu.CompilerParams(dimension_semantics=("arbitrary",)),
        cost_estimate=pl.CostEstimate(
            flops=flops, transcendentals=N * OUTP, bytes_accessed=bytes_accessed),
    )(*args)
    return out_full[:, :CLASSES]


# -------------------------------- parameters & packing --------------------------------
def fold_bn(w, b, gamma, beta, mean, var):
    """Fold eval-mode BatchNorm into a channels-last conv weight (out channel last)."""
    s = gamma / jnp.sqrt(var + BN_EPS)
    return w * s, (b - mean) * s + beta


def init_params(key):
    keys = jax.random.split(key, 24)
    it = iter(keys)
    bf16 = jnp.bfloat16

    def nrm(shape, scale=0.05):
        return scale * jax.random.normal(next(it), shape, dtype=jnp.float32)

    ones = lambda c: jnp.ones((c,), jnp.float32)
    zeros = lambda c: jnp.zeros((c,), jnp.float32)

    params = {}
    # stem conv: torch weight (C_STEM, CIN, K_STEM), bias (C_STEM,)
    w_stem = nrm((C_STEM, CIN, K_STEM))
    b_stem = nrm((C_STEM,))
    w_flat = jnp.transpose(w_stem, (2, 1, 0)).reshape(KC, C_STEM)
    params["w_stem"] = jnp.pad(w_flat, ((0, KCP - KC), (0, 0))).astype(bf16)  # 60 -> 128
    params["b_stem"] = b_stem.reshape(1, C_STEM)

    def make_bottleneck(cin, first):
        wa = nrm((CH, cin, 1));   ba = nrm((CH,))
        wb = nrm((CH, CH, 3));    bb = nrm((CH,))
        wc = nrm((COUT, CH, 1));  bc = nrm((COUT,))
        # BatchNorm eval mode with fresh-init running stats (gamma=1, beta=0, mean=0, var=1).
        wa2, ba2 = fold_bn(wa[:, :, 0].T, ba, ones(CH), zeros(CH), zeros(CH), ones(CH))
        wb2, bb2 = fold_bn(jnp.transpose(wb, (2, 1, 0)), bb,
                           ones(CH), zeros(CH), zeros(CH), ones(CH))
        wc2, bc2 = fold_bn(wc[:, :, 0].T, bc,
                           ones(COUT), zeros(COUT), zeros(COUT), ones(COUT))
        d = dict(wa=wa2.astype(bf16), ba=ba2.reshape(1, CH),
                 wb=wb2.reshape(3 * CH, CH).astype(bf16), bb=bb2.reshape(1, CH),
                 wc=wc2.astype(bf16), bc=bc2.reshape(1, COUT))
        if first:   # residual 1x1 conv (no BN on the PyTorch res_layer)
            wr = nrm((COUT, cin, 1)); br = nrm((COUT,))
            d["wr"] = wr[:, :, 0].T.astype(bf16)
            d["br"] = br.reshape(1, COUT)
        return d

    params["bottlenecks"] = [
        make_bottleneck(C_STEM, True),
        make_bottleneck(COUT, False),
        make_bottleneck(COUT, False),
    ]

    # classifier Linear(256, classes)
    w_lin = nrm((CLASSES, COUT))
    b_lin = nrm((CLASSES,))
    params["w_lin"] = w_lin.T.astype(bf16)          # (COUT, CLASSES)
    params["b_lin"] = b_lin.reshape(1, CLASSES)
    return params


def pack_params(params):
    """Pack all operands into 4 lane-dense slabs (3x bf16 weights, 1x f32 biases)."""
    b1, b2, b3 = params["bottlenecks"]

    w128 = jnp.concatenate([
        params["w_stem"],                                           # 128 rows
        b1["wb"],                                                   # 384
        b2["wa"],                                                   # 256
        b2["wb"],                                                   # 384
        b3["wa"],                                                   # 256
        b3["wb"],                                                   # 384
        jnp.pad(params["w_lin"], ((0, 0), (0, OUTP - CLASSES))),    # 256 (lane-pad 10->128)
    ], axis=0)
    assert w128.shape == (W128_ROWS, 128)

    w256 = jnp.concatenate([b1["wc"], b2["wc"], b3["wc"]], axis=0)
    assert w256.shape == (W256_ROWS, 256)

    w384 = jnp.concatenate([b1["wa"], b1["wr"]], axis=1)            # fused wa1 ++ wr1
    assert w384.shape == (W384_ROWS, 384)

    def brow(b, fill=0.0):
        return jnp.pad(b, ((0, 0), (0, 256 - b.shape[1])), constant_values=fill)

    bslab = jnp.concatenate([
        brow(params["b_stem"]),
        brow(b1["ba"]), brow(b1["br"]), brow(b1["bb"]), brow(b1["bc"]),
        brow(b2["ba"]), brow(b2["bb"]), brow(b2["bc"]),
        brow(b3["ba"]), brow(b3["bb"]), brow(b3["bc"]),
        brow(params["b_lin"], fill=-1e30),    # pad classes get -inf-ish logits
    ], axis=0).astype(jnp.float32)
    assert bslab.shape == (B_ROWS, 256)
    return w128, w256, w384, bslab


def prepare_stem_input(x_ncl):
    """NCL -> NLC, pad, im2col, gather the 3 max-pool taps, fold batch into rows."""
    x = jnp.transpose(x_ncl, (0, 2, 1)).astype(jnp.float32)          # (N, L, CIN)
    x_pad = jnp.pad(x, ((0, 0), (PAD_STEM, PAD_STEM), (0, 0)))
    idx = STRIDE_STEM * jnp.arange(L1)[:, None] + jnp.arange(K_STEM)[None, :]
    x_cols = x_pad[:, idx, :].reshape(N, L1, KC)                     # (N, L1, 60)
    p = 2 * jnp.arange(L2)
    taps = jnp.stack([x_cols[:, p + j, :] for j in range(3)], axis=0)  # (3, N, L2, 60)
    x_stem = taps.reshape(3 * M, KC)
    return jnp.pad(x_stem, ((0, 0), (0, KCP - KC))).astype(jnp.bfloat16)


# ------------------------------ pure-JAX reference -----------------------------------
def reference_forward(x_ncl, params):
    bf16, f32 = jnp.bfloat16, jnp.float32
    x = jnp.transpose(x_ncl, (0, 2, 1)).astype(f32)
    x_pad = jnp.pad(x, ((0, 0), (PAD_STEM, PAD_STEM), (0, 0)))
    idx = STRIDE_STEM * jnp.arange(L1)[:, None] + jnp.arange(K_STEM)[None, :]
    x_cols = x_pad[:, idx, :].reshape(N, L1, KC).astype(bf16)
    y1 = jnp.einsum('nlk,kc->nlc', x_cols, params["w_stem"][:KC],
                    preferred_element_type=f32) + params["b_stem"]
    p = 2 * jnp.arange(L2)
    h = jnp.maximum(jnp.maximum(y1[:, p], y1[:, p + 1]), y1[:, p + 2])   # (N, L2, 128)
    for bp in params["bottlenecks"]:
        a = jax.nn.relu(jnp.einsum('nlc,cd->nld', h.astype(bf16), bp["wa"],
                                   preferred_element_type=f32) + bp["ba"])
        ap = jnp.pad(a, ((0, 0), (1, 1), (0, 0)))
        wb = bp["wb"].reshape(3, CH, CH)
        acc = bp["bb"] + sum(
            jnp.einsum('nlc,cd->nld', ap[:, k:k + L2].astype(bf16), wb[k],
                       preferred_element_type=f32) for k in range(3))
        b = jax.nn.relu(acc)
        c = jax.nn.relu(jnp.einsum('nlc,cd->nld', b.astype(bf16), bp["wc"],
                                   preferred_element_type=f32) + bp["bc"])
        if "wr" in bp:
            res = jnp.einsum('nlc,cd->nld', h.astype(bf16), bp["wr"],
                             preferred_element_type=f32) + bp["br"]
        else:
            res = h
        h = c + res
    feats = h.mean(axis=1)
    logits = jnp.dot(feats.astype(bf16), params["w_lin"],
                     preferred_element_type=f32) + params["b_lin"]
    return jax.nn.softmax(logits, axis=-1)


# ----------------------------------------- main --------------------------------------
if __name__ == "__main__":
    key = jax.random.PRNGKey(0)
    pkey, xkey = jax.random.split(key)
    params = init_params(pkey)
    x = jax.random.normal(xkey, (N, CIN, L), dtype=jnp.float32)      # PyTorch NCL input

    out = cnn1d_forward(x, params)
    out = jax.block_until_ready(out)
    assert out.shape == (N, CLASSES)

    ref = reference_forward(x, params)
    err = float(jnp.max(jnp.abs(out - ref)))
    assert err < 5e-3, f"mismatch vs reference: {err}"
    assert float(jnp.max(jnp.abs(out.sum(-1) - 1.0))) < 1e-4

    print("KERNEL_OK")
</pallas_src>

<mosaic_0001>
module attributes {stable_mosaic.version = 11 : i64} {
  func.func @fused_kernel(%arg0: i32, %arg1: memref<96x128xbf16, #tpu.memory_space<vmem>>, %arg2: memref<2048x128xbf16, #tpu.memory_space<vmem>>, %arg3: memref<384x256xbf16, #tpu.memory_space<vmem>>, %arg4: memref<128x384xbf16, #tpu.memory_space<vmem>>, %arg5: memref<12x256xf32, #tpu.memory_space<vmem>>, %arg6: memref<2x128xf32, #tpu.memory_space<vmem>>) attributes {dimension_semantics = [#tpu.dimension_semantics<arbitrary>], iteration_bounds = array<i64: 1>, scalar_prefetch = 0 : i64, scratch_operands = 0 : i64, tpu.core_type = #tpu.core_type<tc>, window_params = [{pipeline_mode = #tpu.pipeline_mode<synchronous>, transform_indices = @transform_0, window_bounds = array<i64: 96, 128>}, {pipeline_mode = #tpu.pipeline_mode<synchronous>, transform_indices = @transform_1, window_bounds = array<i64: 2048, 128>}, {pipeline_mode = #tpu.pipeline_mode<synchronous>, transform_indices = @transform_2, window_bounds = array<i64: 384, 256>}, {pipeline_mode = #tpu.pipeline_mode<synchronous>, transform_indices = @transform_3, window_bounds = array<i64: 128, 384>}, {pipeline_mode = #tpu.pipeline_mode<synchronous>, transform_indices = @transform_4, window_bounds = array<i64: 12, 256>}, {pipeline_mode = #tpu.pipeline_mode<synchronous>, transform_indices = @transform_5, window_bounds = array<i64: 2, 128>}]} {
    %c0 = arith.constant 0 : index
    %c0_0 = arith.constant 0 : index
    %0 = vector.load %arg2[%c0, %c0_0] : memref<2048x128xbf16, #tpu.memory_space<vmem>>, vector<128x128xbf16>
    %c0_1 = arith.constant 0 : index
    %c0_2 = arith.constant 0 : index
    %1 = vector.load %arg1[%c0_1, %c0_2] : memref<96x128xbf16, #tpu.memory_space<vmem>>, vector<96x128xbf16>
    %cst = arith.constant dense<0.000000e+00> : vector<96x128xf32>
    %2 = tpu.matmul %1, %0, %cst {dimension_numbers = #tpu.dot_dimension_numbers<[1], [0], [0], [1], [0, 0, 1, 1], [], []>} : vector<96x128xbf16>, vector<128x128xbf16>, vector<96x128xf32> -> vector<96x128xf32>
    %3 = vector.extract_strided_slice %2 {offsets = [0, 0], sizes = [32, 128], strides = [1, 1]} : vector<96x128xf32> to vector<32x128xf32>
    %4 = vector.extract_strided_slice %2 {offsets = [32, 0], sizes = [32, 128], strides = [1, 1]} : vector<96x128xf32> to vector<32x128xf32>
    %5 = arith.maximumf %3, %4 : vector<32x128xf32>
    %6 = vector.extract_strided_slice %2 {offsets = [64, 0], sizes = [32, 128], strides = [1, 1]} : vector<96x128xf32> to vector<32x128xf32>
    %7 = arith.maximumf %5, %6 : vector<32x128xf32>
    %c0_3 = arith.constant 0 : index
    %c0_4 = arith.constant 0 : index
    %8 = vector.load %arg5[%c0_3, %c0_4] : memref<12x256xf32, #tpu.memory_space<vmem>>, vector<1x128xf32>
    %9 = vector.broadcast %8 : vector<1x128xf32> to vector<32x128xf32>
    %10 = arith.addf %7, %9 : vector<32x128xf32>
    %11 = tpu.iota {dimensions = array<i32: 0>} : vector<32x128xi32>
    %c16_i32 = arith.constant 16 : i32
    %c0_i32 = arith.constant 0 : i32
    %12 = arith.cmpi eq, %c16_i32, %c0_i32 : i32
    %c1_i32 = arith.constant 1 : i32
    %13 = arith.select %12, %c1_i32, %c16_i32 : i32
    %14 = vector.broadcast %13 : i32 to vector<32x128xi32>
    %15 = arith.remsi %11, %14 : vector<32x128xi32>
    %c0_i32_5 = arith.constant 0 : i32
    %16 = vector.broadcast %c0_i32_5 : i32 to vector<32x128xi32>
    %17 = arith.cmpi ne, %15, %16 : vector<32x128xi32>
    %c0_i32_6 = arith.constant 0 : i32
    %18 = vector.broadcast %c0_i32_6 : i32 to vector<32x128xi32>
    %19 = arith.cmpi slt, %15, %18 : vector<32x128xi32>
    %c0_i32_7 = arith.constant 0 : i32
    %20 = arith.cmpi slt, %13, %c0_i32_7 : i32
    %21 = vector.broadcast %20 : i1 to vector<32x128xi1>
    %22 = vector.broadcast %21 : vector<32x128xi1> to vector<32x128xi1>
    %23 = arith.xori %19, %22 : vector<32x128xi1>
    %24 = arith.andi %23, %17 : vector<32x128xi1>
    %25 = vector.broadcast %13 : i32 to vector<32x128xi32>
    %26 = arith.addi %15, %25 : vector<32x128xi32>
    %27 = arith.select %24, %26, %15 : vector<32x128xi1>, vector<32x128xi32>
    %c0_i32_8 = arith.constant 0 : i32
    %28 = vector.broadcast %c0_i32_8 : i32 to vector<32x128xi32>
    %29 = arith.cmpi sgt, %27, %28 : vector<32x128xi32>
    %c15_i32 = arith.constant 15 : i32
    %30 = vector.broadcast %c15_i32 : i32 to vector<32x128xi32>
    %31 = arith.cmpi slt, %27, %30 : vector<32x128xi32>
    %32 = arith.truncf %10 : vector<32x128xf32> to vector<32x128xbf16>
    %c0_9 = arith.constant 0 : index
    %c0_10 = arith.constant 0 : index
    %33 = vector.load %arg4[%c0_9, %c0_10] : memref<128x384xbf16, #tpu.memory_space<vmem>>, vector<128x384xbf16>
    %cst_11 = arith.constant dense<0.000000e+00> : vector<32x384xf32>
    %34 = tpu.matmul %32, %33, %cst_11 {dimension_numbers = #tpu.dot_dimension_numbers<[1], [0], [0], [1], [0, 0, 1, 1], [], []>} : vector<32x128xbf16>, vector<128x384xbf16>, vector<32x384xf32> -> vector<32x384xf32>
    %35 = vector.extract_strided_slice %34 {offsets = [0, 0], sizes = [32, 128], strides = [1, 1]} : vector<32x384xf32> to vector<32x128xf32>
    %c1 = arith.constant 1 : index
    %c0_12 = arith.constant 0 : index
    %36 = vector.load %arg5[%c1, %c0_12] : memref<12x256xf32, #tpu.memory_space<vmem>>, vector<1x128xf32>
    %37 = vector.broadcast %36 : vector<1x128xf32> to vector<32x128xf32>
    %38 = arith.addf %35, %37 : vector<32x128xf32>
    %cst_13 = arith.constant 0.000000e+00 : f32
    %39 = vector.broadcast %cst_13 : f32 to vector<32x128xf32>
    %40 = arith.maximumf %38, %39 : vector<32x128xf32>
    %41 = vector.extract_strided_slice %34 {offsets = [0, 128], sizes = [32, 256], strides = [1, 1]} : vector<32x384xf32> to vector<32x256xf32>
    %c2 = arith.constant 2 : index
    %c0_14 = arith.constant 0 : index
    %42 = vector.load %arg5[%c2, %c0_14] : memref<12x256xf32, #tpu.memory_space<vmem>>, vector<1x256xf32>
    %43 = vector.broadcast %42 : vector<1x256xf32> to vector<32x256xf32>
    %44 = arith.addf %41, %43 : vector<32x256xf32>
    %c1_i32_15 = arith.constant 1 : i32
    %45 = tpu.dynamic_rotate %40 by %c1_i32_15 dim 0 : vector<32x128xf32>, i32 -> vector<32x128xf32>
    %cst_16 = arith.constant 0.000000e+00 : f32
    %46 = vector.broadcast %cst_16 : f32 to vector<32x128xf32>
    %47 = arith.select %29, %45, %46 : vector<32x128xi1>, vector<32x128xf32>
    %c31_i32 = arith.constant 31 : i32
    %48 = tpu.dynamic_rotate %40 by %c31_i32 dim 0 : vector<32x128xf32>, i32 -> vector<32x128xf32>
    %cst_17 = arith.constant 0.000000e+00 : f32
    %49 = vector.broadcast %cst_17 : f32 to vector<32x128xf32>
    %50 = arith.select %31, %48, %49 : vector<32x128xi1>, vector<32x128xf32>
    %51 = tpu.concatenate %47, %40, %50 in 1 : vector<32x128xf32>, vector<32x128xf32>, vector<32x128xf32> -> vector<32x384xf32>
    %c128 = arith.constant 128 : index
    %c0_18 = arith.constant 0 : index
    %52 = vector.load %arg2[%c128, %c0_18] : memref<2048x128xbf16, #tpu.memory_space<vmem>>, vector<384x128xbf16>
    %c3 = arith.constant 3 : index
    %c0_19 = arith.constant 0 : index
    %53 = vector.load %arg5[%c3, %c0_19] : memref<12x256xf32, #tpu.memory_space<vmem>>, vector<1x128xf32>
    %c0_20 = arith.constant 0 : index
    %c0_21 = arith.constant 0 : index
    %54 = vector.load %arg3[%c0_20, %c0_21] : memref<384x256xbf16, #tpu.memory_space<vmem>>, vector<128x256xbf16>
    %c4 = arith.constant 4 : index
    %c0_22 = arith.constant 0 : index
    %55 = vector.load %arg5[%c4, %c0_22] : memref<12x256xf32, #tpu.memory_space<vmem>>, vector<1x256xf32>
    %56 = arith.truncf %51 : vector<32x384xf32> to vector<32x384xbf16>
    %cst_23 = arith.constant dense<0.000000e+00> : vector<32x128xf32>
    %57 = tpu.matmul %56, %52, %cst_23 {dimension_numbers = #tpu.dot_dimension_numbers<[1], [0], [0], [1], [0, 0, 1, 1], [], []>} : vector<32x384xbf16>, vector<384x128xbf16>, vector<32x128xf32> -> vector<32x128xf32>
    %58 = vector.broadcast %53 : vector<1x128xf32> to vector<32x128xf32>
    %59 = arith.addf %57, %58 : vector<32x128xf32>
    %cst_24 = arith.constant 0.000000e+00 : f32
    %60 = vector.broadcast %cst_24 : f32 to vector<32x128xf32>
    %61 = arith.maximumf %59, %60 : vector<32x128xf32>
    %62 = arith.truncf %61 : vector<32x128xf32> to vector<32x128xbf16>
    %cst_25 = arith.constant dense<0.000000e+00> : vector<32x256xf32>
    %63 = tpu.matmul %62, %54, %cst_25 {dimension_numbers = #tpu.dot_dimension_numbers<[1], [0], [0], [1], [0, 0, 1, 1], [], []>} : vector<32x128xbf16>, vector<128x256xbf16>, vector<32x256xf32> -> vector<32x256xf32>
    %64 = vector.broadcast %55 : vector<1x256xf32> to vector<32x256xf32>
    %65 = arith.addf %63, %64 : vector<32x256xf32>
    %cst_26 = arith.constant 0.000000e+00 : f32
    %66 = vector.broadcast %cst_26 : f32 to vector<32x256xf32>
    %67 = arith.maximumf %65, %66 : vector<32x256xf32>
    %68 = arith.addf %67, %44 : vector<32x256xf32>
    %69 = arith.truncf %68 : vector<32x256xf32> to vector<32x256xbf16>
    %c512 = arith.constant 512 : index
    %c0_27 = arith.constant 0 : index
    %70 = vector.load %arg2[%c512, %c0_27] : memref<2048x128xbf16, #tpu.memory_space<vmem>>, vector<256x128xbf16>
    %cst_28 = arith.constant dense<0.000000e+00> : vector<32x128xf32>
    %71 = tpu.matmul %69, %70, %cst_28 {dimension_numbers = #tpu.dot_dimension_numbers<[1], [0], [0], [1], [0, 0, 1, 1], [], []>} : vector<32x256xbf16>, vector<256x128xbf16>, vector<32x128xf32> -> vector<32x128xf32>
    %c5 = arith.constant 5 : index
    %c0_29 = arith.constant 0 : index
    %72 = vector.load %arg5[%c5, %c0_29] : memref<12x256xf32, #tpu.memory_space<vmem>>, vector<1x128xf32>
    %73 = vector.broadcast %72 : vector<1x128xf32> to vector<32x128xf32>
    %74 = arith.addf %71, %73 : vector<32x128xf32>
    %cst_30 = arith.constant 0.000000e+00 : f32
    %75 = vector.broadcast %cst_30 : f32 to vector<32x128xf32>
    %76 = arith.maximumf %74, %75 : vector<32x128xf32>
    %c1_i32_31 = arith.constant 1 : i32
    %77 = tpu.dynamic_rotate %76 by %c1_i32_31 dim 0 : vector<32x128xf32>, i32 -> vector<32x128xf32>
    %cst_32 = arith.constant 0.000000e+00 : f32
    %78 = vector.broadcast %cst_32 : f32 to vector<32x128xf32>
    %79 = arith.select %29, %77, %78 : vector<32x128xi1>, vector<32x128xf32>
    %c31_i32_33 = arith.constant 31 : i32
    %80 = tpu.dynamic_rotate %76 by %c31_i32_33 dim 0 : vector<32x128xf32>, i32 -> vector<32x128xf32>
    %cst_34 = arith.constant 0.000000e+00 : f32
    %81 = vector.broadcast %cst_34 : f32 to vector<32x128xf32>
    %82 = arith.select %31, %80, %81 : vector<32x128xi1>, vector<32x128xf32>
    %83 = tpu.concatenate %79, %76, %82 in 1 : vector<32x128xf32>, vector<32x128xf32>, vector<32x128xf32> -> vector<32x384xf32>
    %c768 = arith.constant 768 : index
    %c0_35 = arith.constant 0 : index
    %84 = vector.load %arg2[%c768, %c0_35] : memref<2048x128xbf16, #tpu.memory_space<vmem>>, vector<384x128xbf16>
    %c6 = arith.constant 6 : index
    %c0_36 = arith.constant 0 : index
    %85 = vector.load %arg5[%c6, %c0_36] : memref<12x256xf32, #tpu.memory_space<vmem>>, vector<1x128xf32>
    %c128_37 = arith.constant 128 : index
    %c0_38 = arith.constant 0 : index
    %86 = vector.load %arg3[%c128_37, %c0_38] : memref<384x256xbf16, #tpu.memory_space<vmem>>, vector<128x256xbf16>
    %c7 = arith.constant 7 : index
    %c0_39 = arith.constant 0 : index
    %87 = vector.load %arg5[%c7, %c0_39] : memref<12x256xf32, #tpu.memory_space<vmem>>, vector<1x256xf32>
    %88 = arith.truncf %83 : vector<32x384xf32> to vector<32x384xbf16>
    %cst_40 = arith.constant dense<0.000000e+00> : vector<32x128xf32>
    %89 = tpu.matmul %88, %84, %cst_40 {dimension_numbers = #tpu.dot_dimension_numbers<[1], [0], [0], [1], [0, 0, 1, 1], [], []>} : vector<32x384xbf16>, vector<384x128xbf16>, vector<32x128xf32> -> vector<32x128xf32>
    %90 = vector.broadcast %85 : vector<1x128xf32> to vector<32x128xf32>
    %91 = arith.addf %89, %90 : vector<32x128xf32>
    %cst_41 = arith.constant 0.000000e+00 : f32
    %92 = vector.broadcast %cst_41 : f32 to vector<32x128xf32>
    %93 = arith.maximumf %91, %92 : vector<32x128xf32>
    %94 = arith.truncf %93 : vector<32x128xf32> to vector<32x128xbf16>
    %cst_42 = arith.constant dense<0.000000e+00> : vector<32x256xf32>
    %95 = tpu.matmul %94, %86, %cst_42 {dimension_numbers = #tpu.dot_dimension_numbers<[1], [0], [0], [1], [0, 0, 1, 1], [], []>} : vector<32x128xbf16>, vector<128x256xbf16>, vector<32x256xf32> -> vector<32x256xf32>
    %96 = vector.broadcast %87 : vector<1x256xf32> to vector<32x256xf32>
    %97 = arith.addf %95, %96 : vector<32x256xf32>
    %cst_43 = arith.constant 0.000000e+00 : f32
    %98 = vector.broadcast %cst_43 : f32 to vector<32x256xf32>
    %99 = arith.maximumf %97, %98 : vector<32x256xf32>
    %100 = arith.addf %99, %68 : vector<32x256xf32>
    %101 = arith.truncf %100 : vector<32x256xf32> to vector<32x256xbf16>
    %c1152 = arith.constant 1152 : index
    %c0_44 = arith.constant 0 : index
    %102 = vector.load %arg2[%c1152, %c0_44] : memref<2048x128xbf16, #tpu.memory_space<vmem>>, vector<256x128xbf16>
    %cst_45 = arith.constant dense<0.000000e+00> : vector<32x128xf32>
    %103 = tpu.matmul %101, %102, %cst_45 {dimension_numbers = #tpu.dot_dimension_numbers<[1], [0], [0], [1], [0, 0, 1, 1], [], []>} : vector<32x256xbf16>, vector<256x128xbf16>, vector<32x128xf32> -> vector<32x128xf32>
    %c8 = arith.constant 8 : index
    %c0_46 = arith.constant 0 : index
    %104 = vector.load %arg5[%c8, %c0_46] : memref<12x256xf32, #tpu.memory_space<vmem>>, vector<1x128xf32>
    %105 = vector.broadcast %104 : vector<1x128xf32> to vector<32x128xf32>
    %106 = arith.addf %103, %105 : vector<32x128xf32>
    %cst_47 = arith.constant 0.000000e+00 : f32
    %107 = vector.broadcast %cst_47 : f32 to vector<32x128xf32>
    %108 = arith.maximumf %106, %107 : vector<32x128xf32>
    %c1_i32_48 = arith.constant 1 : i32
    %109 = tpu.dynamic_rotate %108 by %c1_i32_48 dim 0 : vector<32x128xf32>, i32 -> vector<32x128xf32>
    %cst_49 = arith.constant 0.000000e+00 : f32
    %110 = vector.broadcast %cst_49 : f32 to vector<32x128xf32>
    %111 = arith.select %29, %109, %110 : vector<32x128xi1>, vector<32x128xf32>
    %c31_i32_50 = arith.constant 31 : i32
    %112 = tpu.dynamic_rotate %108 by %c31_i32_50 dim 0 : vector<32x128xf32>, i32 -> vector<32x128xf32>
    %cst_51 = arith.constant 0.000000e+00 : f32
    %113 = vector.broadcast %cst_51 : f32 to vector<32x128xf32>
    %114 = arith.select %31, %112, %113 : vector<32x128xi1>, vector<32x128xf32>
    %115 = tpu.concatenate %111, %108, %114 in 1 : vector<32x128xf32>, vector<32x128xf32>, vector<32x128xf32> -> vector<32x384xf32>
    %c1408 = arith.constant 1408 : index
    %c0_52 = arith.constant 0 : index
    %116 = vector.load %arg2[%c1408, %c0_52] : memref<2048x128xbf16, #tpu.memory_space<vmem>>, vector<384x128xbf16>
    %c9 = arith.constant 9 : index
    %c0_53 = arith.constant 0 : index
    %117 = vector.load %arg5[%c9, %c0_53] : memref<12x256xf32, #tpu.memory_space<vmem>>, vector<1x128xf32>
    %c256 = arith.constant 256 : index
    %c0_54 = arith.constant 0 : index
    %118 = vector.load %arg3[%c256, %c0_54] : memref<384x256xbf16, #tpu.memory_space<vmem>>, vector<128x256xbf16>
    %c10 = arith.constant 10 : index
    %c0_55 = arith.constant 0 : index
    %119 = vector.load %arg5[%c10, %c0_55] : memref<12x256xf32, #tpu.memory_space<vmem>>, vector<1x256xf32>
    %120 = arith.truncf %115 : vector<32x384xf32> to vector<32x384xbf16>
    %cst_56 = arith.constant dense<0.000000e+00> : vector<32x128xf32>
    %121 = tpu.matmul %120, %116, %cst_56 {dimension_numbers = #tpu.dot_dimension_numbers<[1], [0], [0], [1], [0, 0, 1, 1], [], []>} : vector<32x384xbf16>, vector<384x128xbf16>, vector<32x128xf32> -> vector<32x128xf32>
    %122 = vector.broadcast %117 : vector<1x128xf32> to vector<32x128xf32>
    %123 = arith.addf %121, %122 : vector<32x128xf32>
    %cst_57 = arith.constant 0.000000e+00 : f32
    %124 = vector.broadcast %cst_57 : f32 to vector<32x128xf32>
    %125 = arith.maximumf %123, %124 : vector<32x128xf32>
    %126 = arith.truncf %125 : vector<32x128xf32> to vector<32x128xbf16>
    %cst_58 = arith.constant dense<0.000000e+00> : vector<32x256xf32>
    %127 = tpu.matmul %126, %118, %cst_58 {dimension_numbers = #tpu.dot_dimension_numbers<[1], [0], [0], [1], [0, 0, 1, 1], [], []>} : vector<32x128xbf16>, vector<128x256xbf16>, vector<32x256xf32> -> vector<32x256xf32>
    %128 = vector.broadcast %119 : vector<1x256xf32> to vector<32x256xf32>
    %129 = arith.addf %127, %128 : vector<32x256xf32>
    %cst_59 = arith.constant 0.000000e+00 : f32
    %130 = vector.broadcast %cst_59 : f32 to vector<32x256xf32>
    %131 = arith.maximumf %129, %130 : vector<32x256xf32>
    %132 = arith.addf %131, %100 : vector<32x256xf32>
    %133 = vector.shape_cast %132 : vector<32x256xf32> to vector<2x16x256xf32>
    %cst_60 = arith.constant dense<0.000000e+00> : vector<2x256xf32>
    %134 = vector.multi_reduction <add>, %133, %cst_60 [1] : vector<2x16x256xf32> to vector<2x256xf32>
    %cst_61 = arith.constant 1.600000e+01 : f32
    %135 = vector.broadcast %cst_61 : f32 to vector<2x256xf32>
    %136 = arith.divf %134, %135 : vector<2x256xf32>
    %137 = arith.truncf %136 : vector<2x256xf32> to vector<2x256xbf16>
    %c1792 = arith.constant 1792 : index
    %c0_62 = arith.constant 0 : index
    %138 = vector.load %arg2[%c1792, %c0_62] : memref<2048x128xbf16, #tpu.memory_space<vmem>>, vector<256x128xbf16>
    %cst_63 = arith.constant dense<0.000000e+00> : vector<2x128xf32>
    %139 = tpu.matmul %137, %138, %cst_63 {dimension_numbers = #tpu.dot_dimension_numbers<[1], [0], [0], [1], [0, 0, 1, 1], [], []>} : vector<2x256xbf16>, vector<256x128xbf16>, vector<2x128xf32> -> vector<2x128xf32>
    %c11 = arith.constant 11 : index
    %c0_64 = arith.constant 0 : index
    %140 = vector.load %arg5[%c11, %c0_64] : memref<12x256xf32, #tpu.memory_space<vmem>>, vector<1x128xf32>
    %141 = vector.broadcast %140 : vector<1x128xf32> to vector<2x128xf32>
    %142 = arith.addf %139, %141 : vector<2x128xf32>
    %cst_65 = arith.constant dense<0xFF800000> : vector<2xf32>
    %143 = vector.multi_reduction <maximumf>, %142, %cst_65 [1] : vector<2x128xf32> to vector<2xf32>
    %144 = vector.shape_cast %143 : vector<2xf32> to vector<2x1xf32>
    %145 = vector.broadcast %144 : vector<2x1xf32> to vector<2x128xf32>
    %146 = arith.subf %142, %145 : vector<2x128xf32>
    %147 = math.exp %146 : vector<2x128xf32>
    %cst_66 = arith.constant dense<0.000000e+00> : vector<2xf32>
    %148 = vector.multi_reduction <add>, %147, %cst_66 [1] : vector<2x128xf32> to vector<2xf32>
    %149 = vector.shape_cast %148 : vector<2xf32> to vector<2x1xf32>
    %150 = vector.broadcast %149 : vector<2x1xf32> to vector<2x128xf32>
    %151 = arith.divf %147, %150 : vector<2x128xf32>
    %c0_67 = arith.constant 0 : index
    %c0_68 = arith.constant 0 : index
    %152 = vector.load %arg6[%c0_67, %c0_68] : memref<2x128xf32, #tpu.memory_space<vmem>>, vector<2x128xf32>
    tpu.vector_store %arg6[%c0_67, %c0_68], %151 {strides = array<i32>} : memref<2x128xf32, #tpu.memory_space<vmem>>, vector<2x128xf32>,
    return
  }
  func.func @transform_0(%arg0: i32) -> (i32, i32) {
    %c0_i32 = arith.constant 0 : i32
    %c0_i32_0 = arith.constant 0 : i32
    %c0_i32_1 = arith.constant 0 : i32
    return %c0_i32, %c0_i32_0 : i32, i32
  }
  func.func @transform_1(%arg0: i32) -> (i32, i32) {
    %c0_i32 = arith.constant 0 : i32
    %c0_i32_0 = arith.constant 0 : i32
    %c0_i32_1 = arith.constant 0 : i32
    return %c0_i32, %c0_i32_0 : i32, i32
  }
  func.func @transform_2(%arg0: i32) -> (i32, i32) {
    %c0_i32 = arith.constant 0 : i32
    %c0_i32_0 = arith.constant 0 : i32
    %c0_i32_1 = arith.constant 0 : i32
    return %c0_i32, %c0_i32_0 : i32, i32
  }
  func.func @transform_3(%arg0: i32) -> (i32, i32) {
    %c0_i32 = arith.constant 0 : i32
    %c0_i32_0 = arith.constant 0 : i32
    %c0_i32_1 = arith.constant 0 : i32
    return %c0_i32, %c0_i32_0 : i32, i32
  }
  func.func @transform_4(%arg0: i32) -> (i32, i32) {
    %c0_i32 = arith.constant 0 : i32
    %c0_i32_0 = arith.constant 0 : i32
    %c0_i32_1 = arith.constant 0 : i32
    return %c0_i32, %c0_i32_0 : i32, i32
  }
  func.func @transform_5(%arg0: i32) -> (i32, i32) {
    %c0_i32 = arith.constant 0 : i32
    %c0_i32_0 = arith.constant 0 : i32
    %c0_i32_1 = arith.constant 0 : i32
    return %c0_i32, %c0_i32_0 : i32, i32
  }
}

</mosaic_0001>

<bundles_post_ra>
// kernel: tpu_custom_call.1
= control target key start
LH: loop header
LB: loop body
LE: loop exit
PB: predicated region body
PF: predicated region fallthrough
CT: control target
= control target key end

     0   :  { %10 = vsyncpa [#allocation3], 0  ;;  %s4023_s0 = inlined_call_operand.hbm [shape: bf16[96,128], index: 0, kind: input, shape index: {}]   ;;  %s4024_s1 = inlined_call_operand.hbm [shape: bf16[2048,128], index: 1, kind: input, shape index: {}]   ;;  %s4025_s2 = inlined_call_operand.hbm [shape: bf16[384,256], index: 2, kind: input, shape index: {}]   ;;  %s4026_s3 = inlined_call_operand.hbm [shape: bf16[128,384], index: 3, kind: input, shape index: {}]   ;;  %s4027_s4 = inlined_call_operand.hbm [shape: f32[12,256], index: 4, kind: input, shape index: {}]   ;;  %s4028_s5 = inlined_call_operand.hbm [shape: f32[2,128], index: 5, kind: output, shape index: {}]  }
   0x1   :  { %11 = vsyncpa [#allocation6], 0 }
   0x2   :  { %12 = vsyncpa [#allocation9], 0 }
   0x3   :  { %13 = vsyncpa [#allocation4], 0  ;;  %s3743_s18 = smov [#allocation5]   ;;  %s3744_s20 = smov [#allocation8]  }
   0x4   :  { %s31_s19 = sshll.u32 %s3743_s18, 4  ;;  %s55_s21 = sshll.u32 %s3744_s20, 4  ;;  %s32_s19 = int_to_ptr.vmem [resolvable:$true] %s31_s19  ;;  %s56_s21 = int_to_ptr.vmem [resolvable:$true] %s55_s21 }
   0x5   :  { %s3623_s22 = scalar_lea.vmem %s32_s19, 16384  ;;  %p3628_p1 = scmp.lt.s32.totalorder %s32_s19, %s32_s19 }
   0x6   :  { %p3624_p0 = scmp.ne.s32.totalorder %s32_s19, %s3623_s22  ;;  %p3629_p2 = scmp.lt.s32.totalorder %s3623_s22, %s3623_s22 }
   0x8   :  { %p3630_p3 = por %p3629_p2, %p3628_p1 }
   0xa   :  { %p3631_p4 = pnand %p3630_p3, %p3624_p0 }
   0xc   :  { %3634 = shalt.err (!%p3631_p4)
}
   0xd   :  { %s3745_s23 = smov 64   ;;  %s3746_s24 = smov 4  }
   0xe   :  { %37 = dma.hbm_to_vmem [thread:$0]  %s4024_s1, 16384, %s32_s19, [#allocation6], %s3745_s23, %s3745_s23, %s3746_s24  }
   0xf   :  { %s3643_s27 = scalar_lea.vmem %s56_s21, 3072  ;;  %p3648_p6 = scmp.lt.s32.totalorder %s56_s21, %s56_s21 }
  0x10   :  { %p3644_p5 = scmp.ne.s32.totalorder %s56_s21, %s3643_s27  ;;  %p3649_p7 = scmp.lt.s32.totalorder %s3643_s27, %s3643_s27 }
  0x12   :  { %p3650_p8 = por %p3649_p7, %p3648_p6 }
  0x14   :  { %p3651_p9 = pnand %p3650_p8, %p3644_p5 }
  0x16   :  { %3654 = shalt.err (!%p3651_p9)
}
  0x17   :  { %s3747_s28 = smov 192   ;;  %s3748_s29 = smov 12  }
  0x18   :  { %61 = dma.hbm_to_vmem [thread:$0]  %s4026_s3, 3072, %s56_s21, [#allocation9], %s3747_s28, %s3747_s28, %s3748_s29  }
  0x19   :  { %s3749_s7 = smov [#allocation2]   ;;  %s3750_s9 = smov [#allocation7]  }
  0x1a   :  { %s19_s8 = sshll.u32 %s3749_s7, 4  ;;  %s43_s10 = sshll.u32 %s3750_s9, 4  ;;  %s20_s8 = int_to_ptr.vmem [resolvable:$true] %s19_s8  ;;  %s44_s10 = int_to_ptr.vmem [resolvable:$true] %s43_s10 }
  0x1b   :  { %s3663_s1 = scalar_lea.vmem %s20_s8, 768  ;;  %p3668_p11 = scmp.lt.s32.totalorder %s20_s8, %s20_s8 }
  0x1c   :  { %p3664_p10 = scmp.ne.s32.totalorder %s20_s8, %s3663_s1  ;;  %p3669_p12 = scmp.lt.s32.totalorder %s3663_s1, %s3663_s1 }
  0x1e   :  { %p3670_p13 = por %p3669_p12, %p3668_p11 }
  0x20   :  { %p3671_p0 = pnand %p3670_p13, %p3664_p10 }
  0x22   :  { %3674 = shalt.err (!%p3671_p0)
}
  0x23   :  { %25 = dma.hbm_to_vmem [thread:$0]  %s4023_s0, 768, %s20_s8, [#allocation3], %s3745_s23, %s3745_s23, %s3746_s24  }
  0x24   :  { %s3683_s13 = scalar_lea.vmem %s44_s10, 6144  ;;  %p3688_p2 = scmp.lt.s32.totalorder %s44_s10, %s44_s10 }
  0x25   :  { %p3684_p1 = scmp.ne.s32.totalorder %s44_s10, %s3683_s13  ;;  %p3689_p3 = scmp.lt.s32.totalorder %s3683_s13, %s3683_s13 }
  0x27   :  { %p3690_p4 = por %p3689_p3, %p3688_p2 }
  0x29   :  { %p3691_p5 = pnand %p3690_p4, %p3684_p1 }
  0x2b   :  { %3694 = shalt.err (!%p3691_p5)
}
  0x2c   :  { %s3751_s3 = smov 128   ;;  %s3752_s14 = smov 8  }
  0x2d   :  { %49 = dma.hbm_to_vmem [thread:$0]  %s4025_s2, 6144, %s44_s10, [#allocation6], %s3751_s3, %s3751_s3, %s3752_s14  }
  0x2e   :  { %s3753_s17 = smov [#allocation10]  }
  0x2f   :  { %s67_s18 = sshll.u32 %s3753_s17, 4  ;;  %s68_s18 = int_to_ptr.vmem [resolvable:$true] %s67_s18 }
  0x30   :  { %s3703_s19 = scalar_lea.vmem %s68_s18, 512  ;;  %p3708_p7 = scmp.lt.s32.totalorder %s68_s18, %s68_s18 }
  0x31   :  { %p3704_p6 = scmp.ne.s32.totalorder %s68_s18, %s3703_s19  ;;  %p3709_p8 = scmp.lt.s32.totalorder %s3703_s19, %s3703_s19 }
  0x33   :  { %p3710_p9 = por %p3709_p8, %p3708_p7 }
  0x35   :  { %p3711_p10 = pnand %p3710_p9, %p3704_p6 }
  0x37   :  { %3714 = shalt.err (!%p3711_p10)
}
  0x38   :  { %s3754_s0 = smov 256   ;;  %s3755_s20 = smov 16  }
  0x39   :  { %73 = dma.hbm_to_vmem [thread:$0]  %s4027_s4, 512, %s68_s18, [#allocation9], %s3754_s0, %s3754_s0, %s3755_s20  }
  0x3a   :  { %3735 = dma.done.wait [#allocation3], 768  }
  0x3b   :  { %3736 = vsyncadd [#allocation3], 4294966528 }
  0x3c   :  { %3737 = dma.done.wait [#allocation6], 22528  }
  0x3d   :  { %3738 = vsyncadd [#allocation6], 4294944768 }
  0x3e   :  { %3739 = dma.done.wait [#allocation9], 3584  }
  0x3f   :  { %3740 = vsyncadd [#allocation9], 4294963712  ;;  %v3373_v0 = vld [vmem:[#allocation5 + $0x38] sm:$0xff]   ;;  %v3374_v1 = vld [vmem:[#allocation5 + $0x30] sm:$0xff]   ;;  %v3756_v38 = vmov 0   ;;  %vm3757_vm3 = vmmov 1  }
  0x40   :  { %3249 = vmatprep.subr.bf16.mxu0 %v3373_v0  ;;  %v3375_v2 = vld [vmem:[#allocation5 + $0x28] sm:$0xff]   ;;  %v3376_v3 = vld [vmem:[#allocation5 + $0x20] sm:$0xff]   ;;  %v3381_v4 = vld [vmem:[#allocation2] sm:$0xff]   ;;  %551 = vmatprep.mubr.bf16.mxu1 %v3756_v38  ;;  %vm2618_vm11 = vcmask 1041409   ;;  %vm2761_vm12 = vcmask 1041408   ;;  %s3758_s2 = smov [#allocation11]  }
  0x41   :  { %3250 = vmatpush3.bf16.msra.mxu0 %v3373_v0  ;;  %3265 = vmatprep.mubr.bf16.mxu0 %v3381_v4  ;;  %v3377_v5 = vld [vmem:[#allocation5 + $0x18] sm:$0xff]   ;;  %v3389_v7 = vld [vmem:[#allocation8 + $0xa8] ss:$12 sps:$4 sm:$0xff]   ;;  %v3380_v10 = vld [vmem:[#allocation5] sm:$0xff]   ;;  %s2780_s4 = sshll.u32 %s3758_s2, 4  ;;  %s2781_s4 = int_to_ptr.vmem [resolvable:$true] %s2780_s4 }
  0x42   :  { %3251 = vmatprep.subr.bf16.mxu0 %v3374_v1  ;;  %v3387_v6 = vld [vmem:[#allocation8 + $0xac] ss:$12 sps:$4 sm:$0xff]   ;;  %v3378_v8 = vld [vmem:[#allocation5 + $0x10] sm:$0xff]   ;;  %v3383_v13 = vld [vmem:[#allocation2 + $0x10] sm:$0xff]   ;;  %s3715_s23 = scalar_lea.vmem %s2781_s4, 32  ;;  %p3720_p12 = scmp.lt.s32.totalorder %s2781_s4, %s2781_s4 }
  0x43   :  { %519 = vmatprep.subr.bf16.mxu1 %v3387_v6  ;;  %v3379_v9 = vld [vmem:[#allocation5 + $0x8] sm:$0xff]   ;;  %v3390_v11 = vld [vmem:[#allocation8 + $0xb0] ss:$12 sps:$4 sm:$0xff]   ;;  %v3391_v17 = vld [vmem:[#allocation8 + $0x94] ss:$12 sps:$4 sm:$0xff]   ;;  %p3716_p11 = scmp.ne.s32.totalorder %s2781_s4, %s3715_s23  ;;  %p3721_p13 = scmp.lt.s32.totalorder %s3715_s23, %s3715_s23 }
  0x44   :  { %520 = vmatpush1.bf16.msra.mxu1 %v3389_v7  ;;  %v3382_v12 = vld [vmem:[#allocation2 + $0x8] sm:$0xff]   ;;  %v3384_v14 = vld [vmem:[#allocation2 + $0x18] sm:$0xff]   ;;  %v3385_v15 = vld [vmem:[#allocation2 + $0x20] sm:$0xff]  }
  0x45   :  { %3252 = vmatpush3.bf16.msra.mxu0 %v3374_v1  ;;  %v3386_v16 = vld [vmem:[#allocation2 + $0x28] sm:$0xff]   ;;  %521 = vmatprep.subr.bf16.mxu1 %v3391_v17  ;;  %v3398_v22 = vld [vmem:[#allocation8 + $0x80] ss:$12 sps:$4 sm:$0xff]   ;;  %v3399_v23 = vld [vmem:[#allocation8 + $0x64] ss:$12 sps:$4 sm:$0xff]   ;;  %p3722_p0 = por %p3721_p13, %p3720_p12 }
  0x46   :  { %3253 = vmatprep.subr.bf16.mxu0 %v3375_v2  ;;  %v3393_v18 = vld [vmem:[#allocation8 + $0x90] ss:$12 sps:$4 sm:$0xff]   ;;  %v3394_v19 = vld [vmem:[#allocation8 + $0x98] ss:$12 sps:$4 sm:$0xff]   ;;  %v3401_v24 = vld [vmem:[#allocation8 + $0x60] ss:$12 sps:$4 sm:$0xff]  }
  0x47   :  { %v3395_v20 = vld [vmem:[#allocation8 + $0x7c] ss:$12 sps:$4 sm:$0xff]   ;;  %v3397_v21 = vld [vmem:[#allocation8 + $0x78] ss:$12 sps:$4 sm:$0xff]   ;;  %v3407_v29 = vld [vmem:[#allocation8 + $0x34] ss:$12 sps:$4 sm:$0xff]   ;;  %p3723_p1 = pnand %p3722_p0, %p3716_p11 }
  0x48   :  { %522 = vmatpush1.bf16.msra.mxu1 %v3393_v18  ;;  %v3402_v25 = vld [vmem:[#allocation8 + $0x68] ss:$12 sps:$4 sm:$0xff]   ;;  %v3403_v26 = vld [vmem:[#allocation8 + $0x4c] ss:$12 sps:$4 sm:$0xff]   ;;  %v3406_v28 = vld [vmem:[#allocation8 + $0x50] ss:$12 sps:$4 sm:$0xff]  }
  0x49   :  { %3254 = vmatpush3.bf16.msra.mxu0 %v3375_v2  ;;  %523 = vmatprep.subr.bf16.mxu1 %v3395_v20  ;;  %v3405_v27 = vld [vmem:[#allocation8 + $0x48] ss:$12 sps:$4 sm:$0xff]   ;;  %v3409_v30 = vld [vmem:[#allocation8 + $0x30] ss:$12 sps:$4 sm:$0xff]   ;;  %v3410_v31 = vld [vmem:[#allocation8 + $0x38] ss:$12 sps:$4 sm:$0xff]  }
  0x4a   :  { %3255 = vmatprep.subr.bf16.mxu0 %v3376_v3  ;;  %v3411_v32 = vld [vmem:[#allocation8 + $0x1c] ss:$12 sps:$4 sm:$0xff]   ;;  %v3413_v33 = vld [vmem:[#allocation8 + $0x18] ss:$12 sps:$4 sm:$0xff]   ;;  %v3414_v34 = vld [vmem:[#allocation8 + $0x20] ss:$12 sps:$4 sm:$0xff]  }
  0x4b   :  { %v3415_v35 = vld [vmem:[#allocation8 + $0x4] ss:$12 sps:$4 sm:$0xff]   ;;  %v3417_v36 = vld [vmem:[#allocation8] ss:$12 sps:$4 sm:$0xff]   ;;  %v3418_v37 = vld [vmem:[#allocation8 + $0x8] ss:$12 sps:$4 sm:$0xff]  }
  0x4c   :  { %524 = vmatpush1.bf16.msra.mxu1 %v3397_v21  ;;  %v3419_v39 = vld [vmem:[#allocation5 + $0xb8] sm:$0xff]   ;;  %v291_v60 = vld [vmem:[#allocation10] ss:$0 sm:$0xff]  ;;  %v3423_v6 = vld [vmem:[#allocation5 + $0xf0] sm:$0xff]  }
  0x4d   :  { %3256 = vmatpush3.bf16.msra.mxu0 %v3376_v3  ;;  %525 = vmatprep.subr.bf16.mxu1 %v3399_v23  ;;  %v3420_v40 = vld [vmem:[#allocation5 + $0xf8] sm:$0xff]   ;;  %v3424_v7 = vld [vmem:[#allocation5 + $0x70] sm:$0xff]   ;;  %v3437_v20 = vld [vmem:[#allocation5 + $0x88] sm:$0xff]  }
  0x4e   :  { %3257 = vmatprep.subr.bf16.mxu0 %v3377_v5  ;;  %v3421_v3 = vld [vmem:[#allocation5 + $0x78] sm:$0xff]   ;;  %v3434_v17 = vld [vmem:[#allocation5 + $0x90] sm:$0xff]   ;;  %v3438_v21 = vld [vmem:[#allocation5 + $0xc8] sm:$0xff]  }
  0x4f   :  { %v3435_v18 = vld [vmem:[#allocation5 + $0xd0] sm:$0xff]   ;;  %v3440_v23 = vld [vmem:[#allocation5 + $0x80] sm:$0xff]  }
  0x50   :  { %526 = vmatpush1.bf16.msra.mxu1 %v3401_v24  ;;  %v3441_v24 = vld [vmem:[#allocation5 + $0xc0] sm:$0xff]  }
  0x51   :  { %3258 = vmatpush3.bf16.msra.mxu0 %v3377_v5  ;;  %527 = vmatprep.subr.bf16.mxu1 %v3403_v26  ;;  %v3422_v5 = vld [vmem:[#allocation5 + $0xb0] sm:$0xff]  }
  0x52   :  { %3259 = vmatprep.subr.bf16.mxu0 %v3378_v8  ;;  %v3445_v26 = vld [vmem:[#allocation7 + $0x74] ss:$8 sps:$4 sm:$0xff]  }
  0x54   :  { %528 = vmatpush1.bf16.msra.mxu1 %v3405_v27  ;;  %v296_v27 = vlaneseq }
  0x55   :  { %3260 = vmatpush3.bf16.msra.mxu0 %v3378_v8  ;;  %529 = vmatprep.subr.bf16.mxu1 %v3407_v29  ;;  %v3425_v8 = vld [vmem:[#allocation5 + $0xa8] sm:$0xff]   ;;  %v621_v29 = vld [vmem:[#allocation10 + $0x1] ss:$0 sm:$0xff] }
  0x56   :  { %3261 = vmatprep.subr.bf16.mxu0 %v3379_v9 }
  0x58   :  { %530 = vmatpush1.bf16.msra.mxu1 %v3409_v30  ;;  %v3806_v30 = vshrl.u32 %v296_v27, 7  ;;  %v3463_v27 = vld [vmem:[#allocation7 + $0x14] ss:$8 sps:$4 sm:$0xff]  }
  0x59   :  { %3262 = vmatpush3.bf16.msra.mxu0 %v3379_v9  ;;  %531 = vmatprep.subr.bf16.mxu1 %v3411_v32  ;;  %v3426_v9 = vld [vmem:[#allocation5 + $0xe8] sm:$0xff]  }
  0x5a   :  { %3263 = vmatprep.subr.bf16.mxu0 %v3380_v10  ;;  %vm668_vm0 = vcmp.lt.s32.totalorder %v3806_v30, 7  ;;  %vm655_vm5 = vcmp.lt.s32.totalorder %v3806_v30, 1 }
  0x5c   :  { %532 = vmatpush1.bf16.msra.mxu1 %v3413_v33 }
  0x5d   :  { %3264 = vmatpush3.bf16.msra.mxu0 %v3380_v10  ;;  %533 = vmatprep.subr.bf16.mxu1 %v3415_v35  ;;  %v3427_v10 = vld [vmem:[#allocation5 + $0x68] sm:$0xff]  }
  0x5e   :  { %3277 = vmatprep.subr.bf16.mxu0 %v3390_v11 }
  0x60   :  { %3266 = vmatmul.mubr.bf16.vlgmr.msra.gmra.mxu0 %v3382_v12  ;;  %534 = vmatpush1.bf16.msra.mxu1 %v3417_v36  ;;  %v3429_v12 = vld [vmem:[#allocation5 + $0xe0] sm:$0xff]  }
  0x61   :  { %3269 = vmatprep.mubr.bf16.mxu0 %v3383_v13  ;;  %3278 = vmatpush3.bf16.msra.mxu0 %v3390_v11  ;;  %v3428_v11 = vld [vmem:[#allocation5 + $0xa0] sm:$0xff]  }
  0x62   :  { %3279 = vmatprep.subr.bf16.mxu0 %v3394_v19  ;;  %3057 = vmatprep.subr.bf16.mxu1 %v3419_v39  ;;  %v3430_v13 = vld [vmem:[#allocation5 + $0x60] sm:$0xff]  }
  0x65   :  { %3280 = vmatpush3.bf16.msra.mxu0 %v3394_v19  ;;  %v3436_v19 = vld [vmem:[#allocation5 + $0x50] sm:$0xff]  }
  0x66   :  { %3281 = vmatprep.subr.bf16.mxu0 %v3398_v22 }
  0x68   :  { %3270 = vmatmul.mubr.bf16.gmra.mxu0 %v3384_v14  ;;  %v3431_v14 = vld [vmem:[#allocation5 + $0x98] sm:$0xff]  }
  0x69   :  { %3273 = vmatprep.mubr.bf16.mxu0 %v3385_v15  ;;  %3282 = vmatpush3.bf16.msra.mxu0 %v3398_v22  ;;  %v3432_v15 = vld [vmem:[#allocation5 + $0xd8] sm:$0xff]   ;;  %v3439_v22 = vld [vmem:[#allocation5 + $0x48] sm:$0xff]  }
  0x6a   :  { %3283 = vmatprep.subr.bf16.mxu0 %v3402_v25 }
  0x6d   :  { %3284 = vmatpush3.bf16.msra.mxu0 %v3402_v25  ;;  %v3442_v25 = vld [vmem:[#allocation5 + $0x40] sm:$0xff]  }
  0x6e   :  { %3285 = vmatprep.subr.bf16.mxu0 %v3406_v28 }
  0x70   :  { %3274 = vmatmul.mubr.bf16.gmra.mxu0 %v3386_v16  ;;  %v3433_v16 = vld [vmem:[#allocation5 + $0x58] sm:$0xff]  }
  0x71   :  { %3286 = vmatpush3.bf16.msra.mxu0 %v3406_v28 }
  0x72   :  { %3287 = vmatprep.subr.bf16.mxu0 %v3410_v31 }
  0x75   :  { %3288 = vmatpush3.bf16.msra.mxu0 %v3410_v31 }
  0x76   :  { %3289 = vmatprep.subr.bf16.mxu0 %v3414_v34 }
  0x79   :  { %3290 = vmatpush3.bf16.msra.mxu0 %v3414_v34  ;;  %v298_v34 = vadd.s32 8, %v3806_v30 }
  0x7a   :  { %3291 = vmatprep.subr.bf16.mxu0 %v3418_v37 }
  0x7d   :  { %3292 = vmatpush3.bf16.msra.mxu0 %v3418_v37 }
  0x7e   :  { %3297 = vmatprep.subr.bf16.mxu0 %v3420_v40 }
 0x120   :  { %v3267_v41 = vpop.f32.mrf.mxu0 }
 0x122   :  { %v236_v42 = vpop.f32.mrf.mxu0 }
 0x124   :  { %v3268_v43 = vpop.f32.mrf.mxu0 }
 0x126   :  { %v239_v44 = vpop.f32.mrf.mxu0 }
 0x128   :  { %v3271_v45 = vpop.f32.mrf.mxu0 }
 0x129   :  { %v285_v53 = vmax.f32 %v3267_v41, %v3271_v45  ;;  %v312_v41 = vand.u32 15, %v298_v34  ;;  %v3468_v34 = vld [vmem:[#allocation5 + $0x138] sm:$0xff]  }
 0x12a   :  { %v252_v46 = vpop.f32.mrf.mxu0 }
 0x12b   :  { %v283_v51 = vmax.f32 %v236_v42, %v252_v46  ;;  %v300_v42 = vadd.s32 24, %v3806_v30  ;;  %v305_v46 = vand.u32 15, %v3806_v30  ;;  %vm354_vm1 = vcmp.lt.s32.totalorder %v312_v41, 15  ;;  %v3473_v41 = vld [vmem:[#allocation5 + $0x160] sm:$0xff]  }
 0x12c   :  { %v3272_v47 = vpop.f32.mrf.mxu0  ;;  %vm3827_vm4 = vmpackc.low %vm354_vm1, %vm3757_vm3 }
 0x12d   :  { %v286_v52 = vmax.f32 %v3268_v43, %v3272_v47  ;;  %vm3818_vm2 = vcmp.gt.s32.totalorder %v305_v46, 0 }
 0x12e   :  { %v255_v48 = vpop.f32.mrf.mxu0  ;;  %vm3838_vm7 = vmpackc.low %vm3757_vm3, %vm3818_vm2 }
 0x12f   :  { %v284_v55 = vmax.f32 %v239_v44, %v255_v48 }
 0x130   :  { %v3275_v49 = vpop.f32.mrf.mxu0 }
 0x131   :  { %v289_v58 = vmax.f32 %v285_v53, %v3275_v49 }
 0x132   :  { %v268_v50 = vpop.f32.mrf.mxu0 }
 0x133   :  { %v287_v56 = vmax.f32 %v283_v51, %v268_v50  ;;  %v294_v1 = vadd.f32 %v291_v60, %v289_v58  ;;  %v326_v50 = vand.u32 15, %v300_v42  ;;  %v3474_v42 = vld [vmem:[#allocation5 + $0x120] sm:$0xff]  }
 0x134   :  { %v3276_v54 = vpop.f32.mrf.mxu0 }
 0x135   :  { %v290_v57 = vmax.f32 %v286_v52, %v3276_v54  ;;  %v292_v63 = vadd.f32 %v291_v60, %v287_v56  ;;  %vm356_vm6 = vcmp.lt.s32.totalorder %v326_v50, 15 }
 0x136   :  { %v271_v59 = vpop.f32.mrf.mxu0  ;;  %vm3851_vm8 = vmpackc.low %vm356_vm6, %vm3757_vm3 }
 0x137   :  { %v288_v61 = vmax.f32 %v284_v55, %v271_v59  ;;  %v295_v62 = vadd.f32 %v291_v60, %v290_v57 }
 0x139   :  { %v293_v0 = vadd.f32 %v291_v60, %v288_v61  ;;  %v358_v4 = vpack.c.bf16 %v295_v62, %v294_v1  ;;  %v299_v61 = vadd.s32 16, %v3806_v30  ;;  %v3582_v1 = vld [vmem:[#allocation7 + $0x144] ss:$8 sps:$4 sm:$0xff]  }
 0x13b   :  { %v357_v2 = vpack.c.bf16 %v293_v0, %v292_v63 }
 0x13d   :  { %552 = vmatmul.mubr.bf16.vlgmr.msra.gmra.mxu1 %v357_v2  ;;  %3293 = vmatprep.mubr.bf16.mxu0 %v357_v2 }
 0x13e   :  { %3294 = vmatmul.mubr.bf16.vlgmr.msra.gmra.mxu0 %v358_v4  ;;  %561 = vmatprep.mubr.bf16.mxu1 %v3756_v38 }
 0x13f   :  { %3058 = vmatpush3.bf16.msra.mxu1 %v3421_v3  ;;  %3298 = vmatpush3.bf16.msra.mxu0 %v3420_v40 }
 0x140   :  { %3059 = vmatprep.subr.bf16.mxu1 %v3422_v5  ;;  %3299 = vmatprep.subr.bf16.mxu0 %v3423_v6 }
 0x143   :  { %3060 = vmatpush3.bf16.msra.mxu1 %v3424_v7  ;;  %3300 = vmatpush3.bf16.msra.mxu0 %v3423_v6  ;;  %v3443_v7 = vld [vmem:[#allocation7 + $0x70] ss:$8 sps:$4 sm:$0xff]   ;;  %v3580_v6 = vld [vmem:[#allocation7 + $0x140] ss:$8 sps:$4 sm:$0xff]  }
 0x144   :  { %3061 = vmatprep.subr.bf16.mxu1 %v3425_v8  ;;  %3301 = vmatprep.subr.bf16.mxu0 %v3426_v9 }
 0x145   :  { %562 = vmatmul.mubr.bf16.gmra.mxu1 %v358_v4 }
 0x147   :  { %3062 = vmatpush3.bf16.msra.mxu1 %v3427_v10  ;;  %3302 = vmatpush3.bf16.msra.mxu0 %v3426_v9  ;;  %v319_v10 = vand.u32 15, %v299_v61 }
 0x148   :  { %3063 = vmatprep.subr.bf16.mxu1 %v3428_v11  ;;  %3303 = vmatprep.subr.bf16.mxu0 %v3429_v12  ;;  %v3448_v11 = vld [vmem:[#allocation7 + $0x64] ss:$8 sps:$4 sm:$0xff]  }
 0x149   :  { %vm351_vm9 = vcmp.gt.s32.totalorder %v319_v10, 0 }
 0x14a   :  { %vm3864_vm10 = vmpackc.low %vm3757_vm3, %vm351_vm9 }
 0x14b   :  { %3064 = vmatpush3.bf16.msra.mxu1 %v3430_v13  ;;  %3304 = vmatpush3.bf16.msra.mxu0 %v3429_v12 }
 0x14c   :  { %3065 = vmatprep.subr.bf16.mxu1 %v3431_v14  ;;  %3305 = vmatprep.subr.bf16.mxu0 %v3432_v15  ;;  %v3446_v14 = vld [vmem:[#allocation7 + $0x60] ss:$8 sps:$4 sm:$0xff]  }
 0x14f   :  { %3066 = vmatpush3.bf16.msra.mxu1 %v3433_v16  ;;  %3306 = vmatpush3.bf16.msra.mxu0 %v3432_v15  ;;  %v3451_v15 = vld [vmem:[#allocation7 + $0x54] ss:$8 sps:$4 sm:$0xff]  }
 0x150   :  { %3067 = vmatprep.subr.bf16.mxu1 %v3434_v17  ;;  %3307 = vmatprep.subr.bf16.mxu0 %v3435_v18 }
 0x153   :  { %3068 = vmatpush3.bf16.msra.mxu1 %v3436_v19  ;;  %3308 = vmatpush3.bf16.msra.mxu0 %v3435_v18  ;;  %v3449_v19 = vld [vmem:[#allocation7 + $0x50] ss:$8 sps:$4 sm:$0xff]   ;;  %v3594_v18 = vld [vmem:[#allocation7 + $0x104] ss:$8 sps:$4 sm:$0xff]  }
 0x154   :  { %3069 = vmatprep.subr.bf16.mxu1 %v3437_v20  ;;  %3309 = vmatprep.subr.bf16.mxu0 %v3438_v21 }
 0x157   :  { %3070 = vmatpush3.bf16.msra.mxu1 %v3439_v22  ;;  %3310 = vmatpush3.bf16.msra.mxu0 %v3438_v21  ;;  %v3454_v21 = vld [vmem:[#allocation7 + $0x44] ss:$8 sps:$4 sm:$0xff]   ;;  %v3452_v22 = vld [vmem:[#allocation7 + $0x40] ss:$8 sps:$4 sm:$0xff]  }
 0x158   :  { %3071 = vmatprep.subr.bf16.mxu1 %v3440_v23  ;;  %3311 = vmatprep.subr.bf16.mxu0 %v3441_v24  ;;  %v3457_v23 = vld [vmem:[#allocation7 + $0x34] ss:$8 sps:$4 sm:$0xff]  }
 0x15b   :  { %3072 = vmatpush3.bf16.msra.mxu1 %v3442_v25  ;;  %3312 = vmatpush3.bf16.msra.mxu0 %v3441_v24  ;;  %v3455_v24 = vld [vmem:[#allocation7 + $0x30] ss:$8 sps:$4 sm:$0xff]   ;;  %v3460_v25 = vld [vmem:[#allocation7 + $0x24] ss:$8 sps:$4 sm:$0xff]  }
 0x15c   :  { %1089 = vmatprep.subr.bf16.mxu1 %v3445_v26  ;;  %v3458_v26 = vld [vmem:[#allocation7 + $0x20] ss:$8 sps:$4 sm:$0xff]  }
 0x1fd   :  { %v553_v28 = vpop.f32.mrf.mxu1 }
 0x1fe   :  { %v622_v32 = vadd.f32 %v621_v29, %v553_v28  ;;  %v3461_v28 = vld [vmem:[#allocation7 + $0x10] ss:$8 sps:$4 sm:$0xff]  }
 0x1ff   :  { %v3808_v31 = vpop.f32.mrf.mxu1 }
 0x200   :  { %v626_v37 = vmax.f32 %v622_v32, 0.0  ;;  %v3464_v32 = vld [vmem:[#allocation7] ss:$8 sps:$4 sm:$0xff]  }
 0x201   :  { %v557_v33 = vpop.f32.mrf.mxu1 }
 0x202   :  { %v623_v35 = vadd.f32 %v621_v29, %v557_v33  ;;  %v664_v51 = vrot.slane %v626_v37, 1  ;;  %v651_v62 = vrot.slane %v626_v37, 7  ;;  %v3467_v33 = vld [vmem:[#allocation5 + $0x178] sm:$0xff]  }
 0x203   :  { %v3811_v36 = vpop.f32.mrf.mxu1  ;;  %3095 = vmatprep.subr.bf16.mxu0 %v3467_v33  ;;  %v3486_v33 = vld [vmem:[#allocation5 + $0x1f0] sm:$0xff]  }
 0x204   :  { %v627_v39 = vmax.f32 %v623_v35, 0.0  ;;  %v3469_v35 = vld [vmem:[#allocation5 + $0x170] sm:$0xff]  }
 0x205   :  { %v563_v40 = vpop.f32.mrf.mxu1 }
 0x206   :  { %v624_v43 = vadd.f32 %v621_v29, %v563_v40  ;;  %v745_v44 = vpack.c.bf16 %v627_v39, %v626_v37  ;;  %v665_v47 = vrot.slane %v627_v39, 1  ;;  %v652_v55 = vrot.slane %v627_v39, 7  ;;  %v3470_v37 = vld [vmem:[#allocation5 + $0x130] sm:$0xff]   ;;  %v3471_v39 = vld [vmem:[#allocation5 + $0x168] sm:$0xff]  }
 0x207   :  { %v3814_v45 = vpop.f32.mrf.mxu1  ;;  %v3472_v40 = vld [vmem:[#allocation5 + $0x128] sm:$0xff]  }
 0x208   :  { %v628_v48 = vmax.f32 %v624_v43, 0.0  ;;  %926 = vmatprep.mubr.bf16.mxu1 %v745_v44  ;;  %v671_v58 = vsel %vm668_vm0, %v664_v51, %v665_v47  ;;  %v658_v2 = vsel %vm655_vm5, %v651_v62, %v652_v55  ;;  %v3871_v43 = vpop.f32.mrf.mxu0 }
 0x209   :  { %v567_v49 = vpop.f32.mrf.mxu1 }
 0x20a   :  { %v666_v52 = vrot.slane %v628_v48, 1  ;;  %v625_v53 = vadd.f32 %v621_v29, %v567_v49  ;;  %v653_v13 = vrot.slane %v628_v48, 7  ;;  %v3466_v29 = vld [vmem:[#allocation7 + $0x4] ss:$8 sps:$4 sm:$0xff]   ;;  %v3873_v44 = vpop.f32.mrf.mxu0 }
 0x20c   :  { %v629_v56 = vmax.f32 %v625_v53, 0.0  ;;  %v670_v57 = vsel %vm668_vm0, %v665_v47, %v666_v52  ;;  %v657_v17 = vsel %vm655_vm5, %v652_v55, %v653_v13  ;;  %v3875_v46 = vpop.f32.mrf.mxu0 }
 0x20d   :  { %v2860_v60 = vpack.c.bf16 %v670_v57, %v671_v58 }
 0x20e   :  { %v654_v63 = vrot.slane %v629_v56, 7  ;;  %v667_v0 = vrot.slane %v629_v56, 1  ;;  %v748_v12 = vpack.c.bf16 %v629_v56, %v628_v48  ;;  %v3877_v47 = vpop.f32.mrf.mxu0  ;;  %v3879_v48 = vpop.f32.mrf.mxu1 }
 0x20f   :  { %3313 = vmatprep.mubr.msk.bf16.mxu0 %vm3827_vm4, %v2860_v60 }
 0x210   :  { %v659_v3 = vsel %vm655_vm5, %v654_v63, %v651_v62  ;;  %v669_v4 = vsel %vm668_vm0, %v666_v52, %v667_v0  ;;  %v672_v5 = vsel %vm668_vm0, %v667_v0, %v664_v51  ;;  %v656_v16 = vsel %vm655_vm5, %v653_v13, %v654_v63  ;;  %v725_v52 = vld [vmem:[#allocation10 + $0x3] ss:$0 sm:$0xff] }
 0x211   :  { %v2854_v8 = vpack.c.bf16 %v658_v2, %v659_v3  ;;  %v2863_v9 = vpack.c.bf16 %v672_v5, %v669_v4  ;;  %v2857_v20 = vpack.c.bf16 %v656_v16, %v657_v17 }
 0x213   :  { %2855 = vmatmul.mubr.msk.bf16.vlgmr.msra.gmra.mxu1 %vm3838_vm7, %v2854_v8  ;;  %3314 = vmatmul.mubr.msk.bf16.vlgmr.msra.gmra.mxu0 %vm3851_vm8, %v2863_v9 }
 0x214   :  { %934 = vmatprep.mubr.bf16.mxu1 %v748_v12  ;;  %1090 = vmatpush1.bf16.msra.mxu1 %v3443_v7 }
 0x215   :  { %1091 = vmatprep.subr.bf16.mxu1 %v3448_v11  ;;  %3096 = vmatpush3.bf16.msra.mxu0 %v3468_v34  ;;  %v3488_v34 = vld [vmem:[#allocation5 + $0x1b0] sm:$0xff]  }
 0x216   :  { %3097 = vmatprep.subr.bf16.mxu0 %v3469_v35  ;;  %v3883_v35 = vsub.s32 1, %v3806_v30 }
 0x218   :  { %1092 = vmatpush1.bf16.msra.mxu1 %v3446_v14 }
 0x219   :  { %1093 = vmatprep.subr.bf16.mxu1 %v3451_v15  ;;  %3098 = vmatpush3.bf16.msra.mxu0 %v3470_v37  ;;  %v743_v37 = vld [vmem:[#allocation10 + $0x4] ss:$8 sm:$0x3] }
 0x21a   :  { %3099 = vmatprep.subr.bf16.mxu0 %v3471_v39  ;;  %v3886_v39 = vsub.s32 0, %v3806_v30  ;;  %v3588_v30 = vld [vmem:[#allocation7 + $0x124] ss:$8 sps:$4 sm:$0xff]  }
 0x21b   :  { %2858 = vmatmul.mubr.msk.bf16.gmra.mxu1 %vm3864_vm10, %v2857_v20  ;;  %v3475_v20 = vld [vmem:[#allocation5 + $0x158] sm:$0xff]  }
 0x21c   :  { %1094 = vmatpush1.bf16.msra.mxu1 %v3449_v19  ;;  %1121 = vmatprep.mubr.bf16.mxu1 %v3756_v38 }
 0x21d   :  { %1095 = vmatprep.subr.bf16.mxu1 %v3454_v21  ;;  %3100 = vmatpush3.bf16.msra.mxu0 %v3472_v40  ;;  %v3476_v21 = vld [vmem:[#allocation5 + $0x118] sm:$0xff]   ;;  %v1006_v40 = vrot.slane %v743_v37, %v3883_v35 }
 0x21e   :  { %3101 = vmatprep.subr.bf16.mxu0 %v3473_v41  ;;  %v1002_v41 = vrot.slane %v743_v37, %v3886_v39  ;;  %v3494_v37 = vld [vmem:[#allocation5 + $0x1a0] sm:$0xff]  }
 0x220   :  { %1096 = vmatpush1.bf16.msra.mxu1 %v3452_v22  ;;  %v3477_v22 = vld [vmem:[#allocation5 + $0x150] sm:$0xff]  }
 0x221   :  { %1097 = vmatprep.subr.bf16.mxu1 %v3457_v23  ;;  %3102 = vmatpush3.bf16.msra.mxu0 %v3474_v42  ;;  %v3478_v23 = vld [vmem:[#allocation5 + $0x110] sm:$0xff]  }
 0x222   :  { %3103 = vmatprep.subr.bf16.mxu0 %v3475_v20 }
 0x224   :  { %1098 = vmatpush1.bf16.msra.mxu1 %v3455_v24  ;;  %v3479_v24 = vld [vmem:[#allocation5 + $0x148] sm:$0xff]  }
 0x225   :  { %1099 = vmatprep.subr.bf16.mxu1 %v3460_v25  ;;  %3104 = vmatpush3.bf16.msra.mxu0 %v3476_v21  ;;  %v3480_v25 = vld [vmem:[#allocation5 + $0x108] sm:$0xff]  }
 0x226   :  { %3105 = vmatprep.subr.bf16.mxu0 %v3477_v22 }
 0x228   :  { %1100 = vmatpush1.bf16.msra.mxu1 %v3458_v26  ;;  %v3481_v26 = vld [vmem:[#allocation5 + $0x140] sm:$0xff]  }
 0x229   :  { %1101 = vmatprep.subr.bf16.mxu1 %v3463_v27  ;;  %3106 = vmatpush3.bf16.msra.mxu0 %v3478_v23  ;;  %v3482_v27 = vld [vmem:[#allocation5 + $0x100] sm:$0xff]  }
 0x22a   :  { %3107 = vmatprep.subr.bf16.mxu0 %v3479_v24 }
 0x22c   :  { %1102 = vmatpush1.bf16.msra.mxu1 %v3461_v28  ;;  %v3483_v28 = vld [vmem:[#allocation5 + $0x1f8] sm:$0xff]  }
 0x22d   :  { %1103 = vmatprep.subr.bf16.mxu1 %v3466_v29  ;;  %3108 = vmatpush3.bf16.msra.mxu0 %v3480_v25  ;;  %v3484_v29 = vld [vmem:[#allocation5 + $0x238] sm:$0xff]  }
 0x22e   :  { %3109 = vmatprep.subr.bf16.mxu0 %v3481_v26 }
 0x230   :  { %1104 = vmatpush1.bf16.msra.mxu1 %v3464_v32  ;;  %v3485_v32 = vld [vmem:[#allocation5 + $0x1b8] sm:$0xff]  }
 0x231   :  { %3110 = vmatpush3.bf16.msra.mxu0 %v3482_v27  ;;  %3123 = vmatprep.subr.bf16.mxu1 %v3483_v28 }
 0x232   :  { %3317 = vmatprep.subr.bf16.mxu0 %v3484_v29 }
 0x2d3   :  { %v3073_v49 = vpop.f32.mrf.mxu1  ;;  %v3315_v50 = vpop.f32.mrf.mxu0 }
 0x2d5   :  { %v3074_v51 = vpop.f32.mrf.mxu1  ;;  %v977_v53 = vpop.f32.mrf.mxu0 }
 0x2d6   :  { %v3075_v54 = vadd.f32 %v3074_v51, %v3073_v49 }
 0x2d7   :  { %v3076_v55 = vpop.f32.mrf.mxu1  ;;  %v3316_v57 = vpop.f32.mrf.mxu0 }
 0x2d8   :  { %v929_v56 = vadd.f32 %v3075_v54, %v725_v52 }
 0x2d9   :  { %v3077_v58 = vpop.f32.mrf.mxu1  ;;  %v980_v0 = vpop.f32.mrf.mxu0 }
 0x2da   :  { %v3078_v60 = vadd.f32 %v3077_v58, %v3076_v55  ;;  %v978_v62 = vadd.f32 %v977_v53, %v929_v56 }
 0x2db   :  { %v3079_v61 = vpop.f32.mrf.mxu1 }
 0x2dc   :  { %v932_v63 = vadd.f32 %v3078_v60, %v725_v52  ;;  %v992_v7 = vmax.f32 %v978_v62, 0.0 }
 0x2dd   :  { %v3080_v2 = vpop.f32.mrf.mxu1 }
 0x2de   :  { %v981_v3 = vadd.f32 %v980_v0, %v932_v63  ;;  %v3081_v4 = vadd.f32 %v3080_v2, %v3079_v61 }
 0x2df   :  { %v3082_v5 = vpop.f32.mrf.mxu1 }
 0x2e0   :  { %v993_v8 = vmax.f32 %v981_v3, 0.0  ;;  %v937_v9 = vadd.f32 %v3081_v4, %v725_v52 }
 0x2e1   :  { %v3083_v10 = vpop.f32.mrf.mxu1 }
 0x2e2   :  { %v996_v11 = vpack.c.bf16 %v993_v8, %v992_v7  ;;  %v3084_v12 = vadd.f32 %v3083_v10, %v3082_v5  ;;  %v986_v13 = vadd.f32 %v3315_v50, %v937_v9  ;;  %v631_v50 = vld [vmem:[#allocation10 + $0x2] ss:$8 sm:$0x3] }
 0x2e3   :  { %v636_v55 = vrot.slane %v631_v50, %v3886_v39 }
 0x2e4   :  { %v940_v14 = vadd.f32 %v3084_v12, %v725_v52  ;;  %1122 = vmatmul.mubr.bf16.vlgmr.msra.gmra.mxu1 %v996_v11  ;;  %v994_v16 = vmax.f32 %v986_v13, 0.0 }
 0x2e5   :  { %1131 = vmatprep.mubr.bf16.mxu1 %v3756_v38  ;;  %3124 = vmatpush3.bf16.msra.mxu1 %v3485_v32  ;;  %v645_v62 = vadd.f32 %v636_v55, %v3811_v36  ;;  %v643_v5 = vadd.f32 %v636_v55, %v3808_v31  ;;  %v649_v20 = vadd.f32 %v636_v55, %v3879_v48 }
 0x2e6   :  { %v989_v15 = vadd.f32 %v3316_v57, %v940_v14  ;;  %3125 = vmatprep.subr.bf16.mxu1 %v3486_v33  ;;  %v640_v57 = vrot.slane %v631_v50, %v3883_v35  ;;  %v647_v25 = vadd.f32 %v636_v55, %v3814_v45  ;;  %v3490_v45 = vld [vmem:[#allocation5 + $0x228] sm:$0xff]   ;;  %v3492_v33 = vld [vmem:[#allocation5 + $0x1e0] sm:$0xff]   ;;  %v3499_v50 = vld [vmem:[#allocation5 + $0x210] sm:$0xff]  }
 0x2e7   :  { %v3504_v55 = vld [vmem:[#allocation5 + $0x1c0] sm:$0xff]  }
 0x2e8   :  { %v995_v17 = vmax.f32 %v989_v15, 0.0  ;;  %v644_v2 = vadd.f32 %v640_v57, %v3873_v44  ;;  %v646_v3 = vadd.f32 %v640_v57, %v3877_v47  ;;  %v3487_v15 = vld [vmem:[#allocation5 + $0x230] sm:$0xff]   ;;  %v648_v22 = vadd.f32 %v3871_v43, %v640_v57 }
 0x2e9   :  { %3126 = vmatpush3.bf16.msra.mxu1 %v3488_v34  ;;  %v650_v23 = vadd.f32 %v3875_v46, %v640_v57  ;;  %v3489_v46 = vld [vmem:[#allocation5 + $0x1e8] sm:$0xff]   ;;  %v3493_v34 = vld [vmem:[#allocation5 + $0x220] sm:$0xff]  }
 0x2ea   :  { %v997_v19 = vpack.c.bf16 %v995_v17, %v994_v16  ;;  %3127 = vmatprep.subr.bf16.mxu1 %v3489_v46  ;;  %v3506_v57 = vld [vmem:[#allocation5 + $0x180] sm:$0xff]  }
 0x2ec   :  { %1132 = vmatmul.mubr.bf16.gmra.mxu1 %v997_v19 }
 0x3a4   :  { %v1123_v42 = vpop.f32.mrf.mxu1 }
 0x3a5   :  { %v1124_v52 = vadd.f32 %v1123_v42, %v1002_v41  ;;  %v3497_v42 = vld [vmem:[#allocation5 + $0x198] sm:$0xff]  }
 0x3a6   :  { %v1125_v49 = vpop.f32.mrf.mxu1 }
 0x3a7   :  { %v1126_v51 = vadd.f32 %v1125_v49, %v1006_v40  ;;  %v1142_v63 = vmax.f32 %v1124_v52, 0.0  ;;  %v3498_v49 = vld [vmem:[#allocation5 + $0x1d0] sm:$0xff]   ;;  %v3501_v52 = vld [vmem:[#allocation5 + $0x1c8] sm:$0xff]  }
 0x3a8   :  { %v1127_v53 = vpop.f32.mrf.mxu1 }
 0x3a9   :  { %v1128_v54 = vadd.f32 %v1127_v53, %v1002_v41  ;;  %v1143_v58 = vmax.f32 %v1126_v51, 0.0  ;;  %v3902_v12 = vadd.f32 %v1142_v63, %v643_v5  ;;  %v3500_v51 = vld [vmem:[#allocation5 + $0x190] sm:$0xff]   ;;  %v3502_v53 = vld [vmem:[#allocation5 + $0x208] sm:$0xff]   ;;  %v1194_v63 = vld [vmem:[#allocation10 + $0x5] ss:$0 sm:$0xff] }
 0x3aa   :  { %v1129_v56 = vpop.f32.mrf.mxu1 }
 0x3ab   :  { %v1144_v60 = vmax.f32 %v1128_v54, 0.0  ;;  %v1130_v61 = vadd.f32 %v1129_v56, %v1006_v40  ;;  %v3898_v9 = vadd.f32 %v1143_v58, %v644_v2  ;;  %v3503_v54 = vld [vmem:[#allocation5 + $0x188] sm:$0xff]   ;;  %v3505_v56 = vld [vmem:[#allocation5 + $0x200] sm:$0xff]   ;;  %v3509_v58 = vld [vmem:[#allocation7 + $0xf4] ss:$8 sps:$4 sm:$0xff]  }
 0x3ac   :  { %v1133_v0 = vpop.f32.mrf.mxu1 }
 0x3ad   :  { %v1145_v4 = vmax.f32 %v1130_v61, 0.0  ;;  %v3896_v7 = vadd.f32 %v1144_v60, %v645_v62  ;;  %v1134_v36 = vadd.f32 %v1133_v0, %v1002_v41 }
 0x3ae   :  { %v1135_v8 = vpop.f32.mrf.mxu1 }
 0x3af   :  { %v3900_v10 = vadd.f32 %v1145_v4, %v646_v3  ;;  %v1136_v11 = vadd.f32 %v1135_v8, %v1006_v40  ;;  %v1158_v47 = vpack.c.bf16 %v3896_v7, %v3902_v12  ;;  %v1146_v21 = vmax.f32 %v1134_v36, 0.0 }
 0x3b0   :  { %v1137_v13 = vpop.f32.mrf.mxu1 }
 0x3b1   :  { %v1138_v14 = vadd.f32 %v1137_v13, %v1002_v41  ;;  %v1159_v44 = vpack.c.bf16 %v3900_v10, %v3898_v9  ;;  %v1147_v16 = vmax.f32 %v1136_v11, 0.0  ;;  %v3918_v32 = vadd.f32 %v1146_v21, %v647_v25  ;;  %v3496_v41 = vld [vmem:[#allocation5 + $0x218] sm:$0xff]  }
 0x3b2   :  { %v1139_v31 = vpop.f32.mrf.mxu1 }
 0x3b3   :  { %v1148_v17 = vmax.f32 %v1138_v14, 0.0  ;;  %v1140_v19 = vadd.f32 %v1139_v31, %v1006_v40  ;;  %1323 = vmatprep.mubr.bf16.mxu0 %v1159_v44  ;;  %v3914_v27 = vadd.f32 %v1147_v16, %v648_v22  ;;  %v3495_v40 = vld [vmem:[#allocation5 + $0x1d8] sm:$0xff]  }
 0x3b4   :  { %1324 = vmatmul.mubr.bf16.vlgmr.msra.gmra.mxu0 %v1158_v47 }
 0x3b5   :  { %v1149_v24 = vmax.f32 %v1140_v19, 0.0  ;;  %3318 = vmatpush3.bf16.msra.mxu0 %v3484_v29  ;;  %v3912_v26 = vadd.f32 %v1148_v17, %v649_v20  ;;  %v3491_v29 = vld [vmem:[#allocation5 + $0x1a8] sm:$0xff]  }
 0x3b6   :  { %3319 = vmatprep.subr.bf16.mxu0 %v3487_v15  ;;  %3128 = vmatpush3.bf16.msra.mxu1 %v3491_v29 }
 0x3b7   :  { %v3916_v28 = vadd.f32 %v1149_v24, %v650_v23  ;;  %v1160_v43 = vpack.c.bf16 %v3912_v26, %v3918_v32  ;;  %3129 = vmatprep.subr.bf16.mxu1 %v3492_v33 }
 0x3b9   :  { %v1161_v48 = vpack.c.bf16 %v3916_v28, %v3914_v27  ;;  %3320 = vmatpush3.bf16.msra.mxu0 %v3487_v15 }
 0x3ba   :  { %3321 = vmatprep.subr.bf16.mxu0 %v3490_v45  ;;  %3130 = vmatpush3.bf16.msra.mxu1 %v3494_v37 }
 0x3bb   :  { %1331 = vmatprep.mubr.bf16.mxu0 %v1161_v48  ;;  %3131 = vmatprep.subr.bf16.mxu1 %v3495_v40 }
 0x3bc   :  { %1332 = vmatmul.mubr.bf16.gmra.mxu0 %v1160_v43 }
 0x3bd   :  { %3322 = vmatpush3.bf16.msra.mxu0 %v3490_v45 }
 0x3be   :  { %3323 = vmatprep.subr.bf16.mxu0 %v3493_v34  ;;  %3132 = vmatpush3.bf16.msra.mxu1 %v3497_v42 }
 0x3bf   :  { %3133 = vmatprep.subr.bf16.mxu1 %v3498_v49 }
 0x3c1   :  { %3324 = vmatpush3.bf16.msra.mxu0 %v3493_v34 }
 0x3c2   :  { %3325 = vmatprep.subr.bf16.mxu0 %v3496_v41  ;;  %3134 = vmatpush3.bf16.msra.mxu1 %v3500_v51 }
 0x3c3   :  { %3135 = vmatprep.subr.bf16.mxu1 %v3501_v52 }
 0x3c5   :  { %3326 = vmatpush3.bf16.msra.mxu0 %v3496_v41  ;;  %v3507_v41 = vld [vmem:[#allocation7 + $0xf0] ss:$8 sps:$4 sm:$0xff]  }
 0x3c6   :  { %3327 = vmatprep.subr.bf16.mxu0 %v3499_v50  ;;  %3136 = vmatpush3.bf16.msra.mxu1 %v3503_v54  ;;  %v3515_v54 = vld [vmem:[#allocation7 + $0xd4] ss:$8 sps:$4 sm:$0xff]  }
 0x3c7   :  { %3137 = vmatprep.subr.bf16.mxu1 %v3504_v55 }
 0x3c9   :  { %3328 = vmatpush3.bf16.msra.mxu0 %v3499_v50  ;;  %v3512_v50 = vld [vmem:[#allocation7 + $0xe4] ss:$8 sps:$4 sm:$0xff]  }
 0x3ca   :  { %3329 = vmatprep.subr.bf16.mxu0 %v3502_v53  ;;  %3138 = vmatpush3.bf16.msra.mxu1 %v3506_v57  ;;  %v3513_v57 = vld [vmem:[#allocation7 + $0xd0] ss:$8 sps:$4 sm:$0xff]  }
 0x3cb   :  { %1780 = vmatprep.subr.bf16.mxu1 %v3509_v58 }
 0x3cd   :  { %3330 = vmatpush3.bf16.msra.mxu0 %v3502_v53  ;;  %v3510_v53 = vld [vmem:[#allocation7 + $0xe0] ss:$8 sps:$4 sm:$0xff]  }
 0x3ce   :  { %3331 = vmatprep.subr.bf16.mxu0 %v3505_v56 }
 0x3d1   :  { %3332 = vmatpush3.bf16.msra.mxu0 %v3505_v56 }
 0x474   :  { %v3111_v60 = vpop.f32.mrf.mxu0 }
 0x476   :  { %v3112_v61 = vpop.f32.mrf.mxu0 }
 0x477   :  { %v3113_v62 = vadd.f32 %v3112_v61, %v3111_v60  ;;  %v3518_v60 = vld [vmem:[#allocation7 + $0xc4] ss:$8 sps:$4 sm:$0xff]   ;;  %v3516_v61 = vld [vmem:[#allocation7 + $0xc0] ss:$8 sps:$4 sm:$0xff]  }
 0x478   :  { %v3114_v0 = vpop.f32.mrf.mxu0 }
 0x479   :  { %v1326_v3 = vadd.f32 %v3113_v62, %v1194_v63  ;;  %v3521_v62 = vld [vmem:[#allocation7 + $0xb4] ss:$8 sps:$4 sm:$0xff]  }
 0x47a   :  { %v3115_v2 = vpop.f32.mrf.mxu0 }
 0x47b   :  { %v3116_v4 = vadd.f32 %v3115_v2, %v3114_v0  ;;  %v1340_v36 = vmax.f32 %v1326_v3, 0.0  ;;  %v3524_v0 = vld [vmem:[#allocation7 + $0xa4] ss:$8 sps:$4 sm:$0xff]   ;;  %v3522_v2 = vld [vmem:[#allocation7 + $0xa0] ss:$8 sps:$4 sm:$0xff]  }
 0x47c   :  { %v3117_v5 = vpop.f32.mrf.mxu0  ;;  %v3527_v3 = vld [vmem:[#allocation7 + $0x94] ss:$8 sps:$4 sm:$0xff]  }
 0x47d   :  { %v1329_v8 = vadd.f32 %v3116_v4, %v1194_v63  ;;  %v1356_v20 = vrot.slane %v1340_v36, 1  ;;  %v1344_v46 = vrot.slane %v1340_v36, 7  ;;  %v3525_v4 = vld [vmem:[#allocation7 + $0x90] ss:$8 sps:$4 sm:$0xff]  }
 0x47e   :  { %v3118_v11 = vpop.f32.mrf.mxu0 }
 0x47f   :  { %v1341_v13 = vmax.f32 %v1329_v8, 0.0  ;;  %v3119_v14 = vadd.f32 %v3118_v11, %v3117_v5  ;;  %v3530_v5 = vld [vmem:[#allocation7 + $0x84] ss:$8 sps:$4 sm:$0xff]   ;;  %v3528_v8 = vld [vmem:[#allocation7 + $0x80] ss:$8 sps:$4 sm:$0xff]   ;;  %v3531_v11 = vld [vmem:[#allocation5 + $0x2b8] sm:$0xff]  }
 0x480   :  { %v3120_v44 = vpop.f32.mrf.mxu0  ;;  %3161 = vmatprep.subr.bf16.mxu0 %v3531_v11  ;;  %v3548_v11 = vld [vmem:[#allocation5 + $0x378] sm:$0xff]  }
 0x481   :  { %v1334_v47 = vadd.f32 %v3119_v14, %v1194_v63  ;;  %v1436_v31 = vpack.c.bf16 %v1341_v13, %v1340_v36  ;;  %v1357_v16 = vrot.slane %v1341_v13, 1  ;;  %v1345_v23 = vrot.slane %v1341_v13, 7  ;;  %v3532_v36 = vld [vmem:[#allocation5 + $0x278] sm:$0xff]   ;;  %v3533_v13 = vld [vmem:[#allocation5 + $0x2b0] sm:$0xff]  }
 0x482   :  { %v3121_v15 = vpop.f32.mrf.mxu0  ;;  %v3534_v14 = vld [vmem:[#allocation5 + $0x270] sm:$0xff]  }
 0x483   :  { %v1342_v17 = vmax.f32 %v1334_v47, 0.0  ;;  %v3122_v19 = vadd.f32 %v3121_v15, %v3120_v44  ;;  %1617 = vmatprep.mubr.bf16.mxu1 %v1436_v31  ;;  %v1362_v48 = vsel %vm668_vm0, %v1356_v20, %v1357_v16  ;;  %v1350_v33 = vsel %vm655_vm5, %v1344_v46, %v1345_v23  ;;  %v3535_v44 = vld [vmem:[#allocation5 + $0x2a8] sm:$0xff]   ;;  %v3537_v31 = vld [vmem:[#allocation5 + $0x2a0] sm:$0xff]  }
 0x484   :  { %v3536_v47 = vld [vmem:[#allocation5 + $0x268] sm:$0xff]   ;;  %v3538_v15 = vld [vmem:[#allocation5 + $0x260] sm:$0xff]  }
 0x485   :  { %v1358_v21 = vrot.slane %v1342_v17, 1  ;;  %v1337_v22 = vadd.f32 %v3122_v19, %v1194_v63  ;;  %v1346_v52 = vrot.slane %v1342_v17, 7  ;;  %v3519_v63 = vld [vmem:[#allocation7 + $0xb0] ss:$8 sps:$4 sm:$0xff]  }
 0x487   :  { %v1343_v24 = vmax.f32 %v1337_v22, 0.0  ;;  %v1361_v25 = vsel %vm668_vm0, %v1357_v16, %v1358_v21  ;;  %v1349_v56 = vsel %vm655_vm5, %v1345_v23, %v1346_v52 }
 0x488   :  { %v2928_v43 = vpack.c.bf16 %v1361_v25, %v1362_v48 }
 0x489   :  { %v1347_v45 = vrot.slane %v1343_v24, 7  ;;  %v1359_v29 = vrot.slane %v1343_v24, 1  ;;  %v1439_v51 = vpack.c.bf16 %v1343_v24, %v1342_v17 }
 0x48a   :  { %3333 = vmatprep.mubr.msk.bf16.mxu0 %vm3827_vm4, %v2928_v43 }
 0x48b   :  { %v1351_v34 = vsel %vm655_vm5, %v1347_v45, %v1344_v46  ;;  %v1360_v37 = vsel %vm668_vm0, %v1358_v21, %v1359_v29  ;;  %v1363_v40 = vsel %vm668_vm0, %v1359_v29, %v1356_v20  ;;  %v1348_v55 = vsel %vm655_vm5, %v1346_v52, %v1347_v45  ;;  %v1416_v20 = vld [vmem:[#allocation10 + $0x6] ss:$0 sm:$0xff] }
 0x48c   :  { %v2922_v42 = vpack.c.bf16 %v1350_v33, %v1351_v34  ;;  %v2931_v49 = vpack.c.bf16 %v1363_v40, %v1360_v37  ;;  %v2925_v58 = vpack.c.bf16 %v1348_v55, %v1349_v56 }
 0x48e   :  { %2923 = vmatmul.mubr.msk.bf16.vlgmr.msra.gmra.mxu1 %vm3838_vm7, %v2922_v42  ;;  %3334 = vmatmul.mubr.msk.bf16.vlgmr.msra.gmra.mxu0 %vm3851_vm8, %v2931_v49 }
 0x48f   :  { %1625 = vmatprep.mubr.bf16.mxu1 %v1439_v51  ;;  %1781 = vmatpush1.bf16.msra.mxu1 %v3507_v41 }
 0x490   :  { %1782 = vmatprep.subr.bf16.mxu1 %v3512_v50  ;;  %3162 = vmatpush3.bf16.msra.mxu0 %v3532_v36  ;;  %v3549_v36 = vld [vmem:[#allocation5 + $0x2f8] sm:$0xff]  }
 0x491   :  { %3163 = vmatprep.subr.bf16.mxu0 %v3533_v13  ;;  %v3550_v13 = vld [vmem:[#allocation5 + $0x330] sm:$0xff]  }
 0x493   :  { %1783 = vmatpush1.bf16.msra.mxu1 %v3510_v53 }
 0x494   :  { %1784 = vmatprep.subr.bf16.mxu1 %v3515_v54  ;;  %3164 = vmatpush3.bf16.msra.mxu0 %v3534_v14  ;;  %v3552_v14 = vld [vmem:[#allocation5 + $0x2f0] sm:$0xff]  }
 0x495   :  { %3165 = vmatprep.subr.bf16.mxu0 %v3535_v44  ;;  %v1434_v44 = vld [vmem:[#allocation10 + $0x7] ss:$8 sm:$0x3] }
 0x496   :  { %2926 = vmatmul.mubr.msk.bf16.gmra.mxu1 %vm3864_vm10, %v2925_v58 }
 0x497   :  { %1785 = vmatpush1.bf16.msra.mxu1 %v3513_v57  ;;  %1812 = vmatprep.mubr.bf16.mxu1 %v3756_v38 }
 0x498   :  { %1786 = vmatprep.subr.bf16.mxu1 %v3518_v60  ;;  %3166 = vmatpush3.bf16.msra.mxu0 %v3536_v47  ;;  %v1697_v47 = vrot.slane %v1434_v44, %v3883_v35 }
 0x499   :  { %3167 = vmatprep.subr.bf16.mxu0 %v3537_v31  ;;  %v1693_v31 = vrot.slane %v1434_v44, %v3886_v39  ;;  %v3569_v44 = vld [vmem:[#allocation5 + $0x340] sm:$0xff]  }
 0x49b   :  { %1787 = vmatpush1.bf16.msra.mxu1 %v3516_v61  ;;  %v3539_v61 = vld [vmem:[#allocation5 + $0x298] sm:$0xff]  }
 0x49c   :  { %1788 = vmatprep.subr.bf16.mxu1 %v3521_v62  ;;  %3168 = vmatpush3.bf16.msra.mxu0 %v3538_v15  ;;  %v3540_v62 = vld [vmem:[#allocation5 + $0x258] sm:$0xff]  }
 0x49d   :  { %3169 = vmatprep.subr.bf16.mxu0 %v3539_v61 }
 0x49f   :  { %1789 = vmatpush1.bf16.msra.mxu1 %v3519_v63  ;;  %v3541_v63 = vld [vmem:[#allocation5 + $0x290] sm:$0xff]  }
 0x4a0   :  { %1790 = vmatprep.subr.bf16.mxu1 %v3524_v0  ;;  %3170 = vmatpush3.bf16.msra.mxu0 %v3540_v62  ;;  %v3542_v0 = vld [vmem:[#allocation5 + $0x250] sm:$0xff]   ;;  %v3554_v62 = vld [vmem:[#allocation5 + $0x368] sm:$0xff]  }
 0x4a1   :  { %3171 = vmatprep.subr.bf16.mxu0 %v3541_v63  ;;  %v3555_v63 = vld [vmem:[#allocation5 + $0x2e8] sm:$0xff]  }
 0x4a3   :  { %1791 = vmatpush1.bf16.msra.mxu1 %v3522_v2  ;;  %v3543_v2 = vld [vmem:[#allocation5 + $0x288] sm:$0xff]  }
 0x4a4   :  { %1792 = vmatprep.subr.bf16.mxu1 %v3527_v3  ;;  %3172 = vmatpush3.bf16.msra.mxu0 %v3542_v0  ;;  %v3544_v3 = vld [vmem:[#allocation5 + $0x248] sm:$0xff]   ;;  %v3559_v0 = vld [vmem:[#allocation5 + $0x318] sm:$0xff]  }
 0x4a5   :  { %3173 = vmatprep.subr.bf16.mxu0 %v3543_v2  ;;  %v3560_v2 = vld [vmem:[#allocation5 + $0x358] sm:$0xff]  }
 0x4a7   :  { %1793 = vmatpush1.bf16.msra.mxu1 %v3525_v4  ;;  %v3545_v4 = vld [vmem:[#allocation5 + $0x280] sm:$0xff]  }
 0x4a8   :  { %1794 = vmatprep.subr.bf16.mxu1 %v3530_v5  ;;  %3174 = vmatpush3.bf16.msra.mxu0 %v3544_v3  ;;  %v3546_v5 = vld [vmem:[#allocation5 + $0x240] sm:$0xff]   ;;  %v3561_v3 = vld [vmem:[#allocation5 + $0x2d8] sm:$0xff]  }
 0x4a9   :  { %3175 = vmatprep.subr.bf16.mxu0 %v3545_v4  ;;  %v3562_v4 = vld [vmem:[#allocation5 + $0x310] sm:$0xff]  }
 0x4ab   :  { %1795 = vmatpush1.bf16.msra.mxu1 %v3528_v8  ;;  %v3547_v8 = vld [vmem:[#allocation5 + $0x338] sm:$0xff]  }
 0x4ac   :  { %3176 = vmatpush3.bf16.msra.mxu0 %v3546_v5  ;;  %3189 = vmatprep.subr.bf16.mxu1 %v3547_v8  ;;  %v3563_v5 = vld [vmem:[#allocation5 + $0x350] sm:$0xff]  }
 0x4ad   :  { %3337 = vmatprep.subr.bf16.mxu0 %v3548_v11  ;;  %v3564_v8 = vld [vmem:[#allocation5 + $0x2d0] sm:$0xff]  }
 0x54e   :  { %v3139_v16 = vpop.f32.mrf.mxu1  ;;  %v3335_v17 = vpop.f32.mrf.mxu0 }
 0x550   :  { %v3140_v19 = vpop.f32.mrf.mxu1  ;;  %v1668_v21 = vpop.f32.mrf.mxu0 }
 0x551   :  { %v3141_v22 = vadd.f32 %v3140_v19, %v3139_v16 }
 0x552   :  { %v3142_v23 = vpop.f32.mrf.mxu1  ;;  %v3336_v25 = vpop.f32.mrf.mxu0 }
 0x553   :  { %v1620_v24 = vadd.f32 %v3141_v22, %v1416_v20 }
 0x554   :  { %v3143_v48 = vpop.f32.mrf.mxu1  ;;  %v1671_v33 = vpop.f32.mrf.mxu0 }
 0x555   :  { %v3144_v43 = vadd.f32 %v3143_v48, %v3142_v23  ;;  %v1669_v45 = vadd.f32 %v1668_v21, %v1620_v24 }
 0x556   :  { %v3145_v46 = vpop.f32.mrf.mxu1 }
 0x557   :  { %v1623_v29 = vadd.f32 %v3144_v43, %v1416_v20  ;;  %v1683_v42 = vmax.f32 %v1669_v45, 0.0 }
 0x558   :  { %v3146_v34 = vpop.f32.mrf.mxu1 }
 0x559   :  { %v1672_v37 = vadd.f32 %v1671_v33, %v1623_v29  ;;  %v3147_v40 = vadd.f32 %v3146_v34, %v3145_v46 }
 0x55a   :  { %v3148_v41 = vpop.f32.mrf.mxu1 }
 0x55b   :  { %v1684_v49 = vmax.f32 %v1672_v37, 0.0  ;;  %v1628_v50 = vadd.f32 %v3147_v40, %v1416_v20 }
 0x55c   :  { %v3149_v51 = vpop.f32.mrf.mxu1 }
 0x55d   :  { %v1687_v52 = vpack.c.bf16 %v1684_v49, %v1683_v42  ;;  %v3150_v53 = vadd.f32 %v3149_v51, %v3148_v41  ;;  %v1677_v54 = vadd.f32 %v3335_v17, %v1628_v50 }
 0x55f   :  { %v1631_v55 = vadd.f32 %v3150_v53, %v1416_v20  ;;  %1813 = vmatmul.mubr.bf16.vlgmr.msra.gmra.mxu1 %v1687_v52  ;;  %v1685_v57 = vmax.f32 %v1677_v54, 0.0  ;;  %v3551_v52 = vld [vmem:[#allocation5 + $0x370] sm:$0xff]  }
 0x560   :  { %1822 = vmatprep.mubr.bf16.mxu1 %v3756_v38  ;;  %3190 = vmatpush3.bf16.msra.mxu1 %v3549_v36  ;;  %v3566_v36 = vld [vmem:[#allocation5 + $0x348] sm:$0xff]  }
 0x561   :  { %v1680_v56 = vadd.f32 %v3336_v25, %v1631_v55  ;;  %3191 = vmatprep.subr.bf16.mxu1 %v3550_v13  ;;  %v3567_v13 = vld [vmem:[#allocation5 + $0x2c8] sm:$0xff]  }
 0x563   :  { %v1686_v58 = vmax.f32 %v1680_v56, 0.0 }
 0x564   :  { %3192 = vmatpush3.bf16.msra.mxu1 %v3552_v14  ;;  %v3568_v14 = vld [vmem:[#allocation5 + $0x300] sm:$0xff]  }
 0x565   :  { %v1688_v60 = vpack.c.bf16 %v1686_v58, %v1685_v57 }
 0x567   :  { %1823 = vmatmul.mubr.bf16.gmra.mxu1 %v1688_v60 }
 0x61f   :  { %v1814_v15 = vpop.f32.mrf.mxu1 }
 0x620   :  { %v1815_v19 = vadd.f32 %v1814_v15, %v1693_v31 }
 0x621   :  { %v1816_v16 = vpop.f32.mrf.mxu1 }
 0x622   :  { %v1817_v17 = vadd.f32 %v1816_v16, %v1697_v47  ;;  %v1833_v48 = vmax.f32 %v1815_v19, 0.0  ;;  %v1885_v19 = vld [vmem:[#allocation10 + $0x10] ss:$0 sm:$0xff] }
 0x623   :  { %v1818_v20 = vpop.f32.mrf.mxu1 }
 0x624   :  { %v1819_v21 = vadd.f32 %v1818_v20, %v1693_v31  ;;  %v1834_v23 = vmax.f32 %v1817_v17, 0.0  ;;  %v3962_v40 = vadd.f32 %v1833_v48, %v3902_v12 }
 0x625   :  { %v1820_v22 = vpop.f32.mrf.mxu1 }
 0x626   :  { %v1835_v24 = vmax.f32 %v1819_v21, 0.0  ;;  %v1821_v25 = vadd.f32 %v1820_v22, %v1697_v47  ;;  %v3956_v33 = vadd.f32 %v1834_v23, %v3898_v9 }
 0x627   :  { %v1824_v43 = vpop.f32.mrf.mxu1 }
 0x628   :  { %v1836_v46 = vmax.f32 %v1821_v25, 0.0  ;;  %v3953_v45 = vadd.f32 %v1835_v24, %v3896_v7  ;;  %v1825_v41 = vadd.f32 %v1824_v43, %v1693_v31 }
 0x629   :  { %v1826_v29 = vpop.f32.mrf.mxu1 }
 0x62a   :  { %v3959_v34 = vadd.f32 %v1836_v46, %v3900_v10  ;;  %v1827_v37 = vadd.f32 %v1826_v29, %v1697_v47  ;;  %v1849_v7 = vpack.c.bf16 %v3953_v45, %v3962_v40  ;;  %v1837_v10 = vmax.f32 %v1825_v41, 0.0 }
 0x62b   :  { %v1828_v42 = vpop.f32.mrf.mxu1 }
 0x62c   :  { %v1829_v49 = vadd.f32 %v1828_v42, %v1693_v31  ;;  %v1850_v50 = vpack.c.bf16 %v3959_v34, %v3956_v33  ;;  %v1838_v9 = vmax.f32 %v1827_v37, 0.0  ;;  %v3978_v58 = vadd.f32 %v1837_v10, %v3918_v32  ;;  %v3558_v32 = vld [vmem:[#allocation5 + $0x2e0] sm:$0xff]   ;;  %v3573_v31 = vld [vmem:[#allocation7 + $0x174] ss:$8 sps:$4 sm:$0xff]  }
 0x62d   :  { %v1830_v51 = vpop.f32.mrf.mxu1 }
 0x62e   :  { %v1839_v53 = vmax.f32 %v1829_v49, 0.0  ;;  %v1831_v54 = vadd.f32 %v1830_v51, %v1697_v47  ;;  %2014 = vmatprep.mubr.bf16.mxu0 %v1850_v50  ;;  %v3972_v56 = vadd.f32 %v1838_v9, %v3914_v27  ;;  %v3556_v27 = vld [vmem:[#allocation5 + $0x320] sm:$0xff]  }
 0x62f   :  { %2015 = vmatmul.mubr.bf16.vlgmr.msra.gmra.mxu0 %v1849_v7  ;;  %v3570_v47 = vld [vmem:[#allocation5 + $0x2c0] sm:$0xff]  }
 0x630   :  { %v1840_v55 = vmax.f32 %v1831_v54, 0.0  ;;  %3338 = vmatpush3.bf16.msra.mxu0 %v3548_v11  ;;  %v3969_v12 = vadd.f32 %v1839_v53, %v3912_v26  ;;  %v3553_v26 = vld [vmem:[#allocation5 + $0x328] sm:$0xff]  }
 0x631   :  { %3339 = vmatprep.subr.bf16.mxu0 %v3551_v52  ;;  %3193 = vmatprep.subr.bf16.mxu1 %v3553_v26  ;;  %v3565_v11 = vld [vmem:[#allocation5 + $0x308] sm:$0xff]  }
 0x632   :  { %v3975_v57 = vadd.f32 %v1840_v55, %v3916_v28  ;;  %v1851_v61 = vpack.c.bf16 %v3969_v12, %v3978_v58  ;;  %3194 = vmatpush3.bf16.msra.mxu1 %v3555_v63  ;;  %v3557_v28 = vld [vmem:[#allocation5 + $0x360] sm:$0xff]  }
 0x633   :  { %3195 = vmatprep.subr.bf16.mxu1 %v3556_v27 }
 0x634   :  { %v1852_v60 = vpack.c.bf16 %v3975_v57, %v3972_v56  ;;  %3340 = vmatpush3.bf16.msra.mxu0 %v3551_v52 }
 0x635   :  { %3341 = vmatprep.subr.bf16.mxu0 %v3554_v62 }
 0x636   :  { %2022 = vmatprep.mubr.bf16.mxu0 %v1852_v60  ;;  %3196 = vmatpush3.bf16.msra.mxu1 %v3558_v32 }
 0x637   :  { %2023 = vmatmul.mubr.bf16.gmra.mxu0 %v1851_v61  ;;  %3197 = vmatprep.subr.bf16.mxu1 %v3559_v0 }
 0x638   :  { %3342 = vmatpush3.bf16.msra.mxu0 %v3554_v62 }
 0x639   :  { %3343 = vmatprep.subr.bf16.mxu0 %v3557_v28 }
 0x63a   :  { %3198 = vmatpush3.bf16.msra.mxu1 %v3561_v3 }
 0x63b   :  { %3199 = vmatprep.subr.bf16.mxu1 %v3562_v4 }
 0x63c   :  { %3344 = vmatpush3.bf16.msra.mxu0 %v3557_v28 }
 0x63d   :  { %3345 = vmatprep.subr.bf16.mxu0 %v3560_v2 }
 0x63e   :  { %3200 = vmatpush3.bf16.msra.mxu1 %v3564_v8 }
 0x63f   :  { %3201 = vmatprep.subr.bf16.mxu1 %v3565_v11  ;;  %v3574_v11 = vld [vmem:[#allocation7 + $0x160] ss:$8 sps:$4 sm:$0xff]  }
 0x640   :  { %3346 = vmatpush3.bf16.msra.mxu0 %v3560_v2  ;;  %v3571_v2 = vld [vmem:[#allocation7 + $0x170] ss:$8 sps:$4 sm:$0xff]  }
 0x641   :  { %3347 = vmatprep.subr.bf16.mxu0 %v3563_v5 }
 0x642   :  { %3202 = vmatpush3.bf16.msra.mxu1 %v3567_v13 }
 0x643   :  { %3203 = vmatprep.subr.bf16.mxu1 %v3568_v14 }
 0x644   :  { %3348 = vmatpush3.bf16.msra.mxu0 %v3563_v5  ;;  %v3576_v5 = vld [vmem:[#allocation7 + $0x164] ss:$8 sps:$4 sm:$0xff]  }
 0x645   :  { %3349 = vmatprep.subr.bf16.mxu0 %v3566_v36 }
 0x646   :  { %3204 = vmatpush3.bf16.msra.mxu1 %v3570_v47 }
 0x647   :  { %2471 = vmatprep.subr.bf16.mxu1 %v3573_v31  ;;  %v3585_v31 = vld [vmem:[#allocation7 + $0x134] ss:$8 sps:$4 sm:$0xff]  }
 0x648   :  { %3350 = vmatpush3.bf16.msra.mxu0 %v3566_v36  ;;  %v3579_v36 = vld [vmem:[#allocation7 + $0x154] ss:$8 sps:$4 sm:$0xff]  }
 0x649   :  { %3351 = vmatprep.subr.bf16.mxu0 %v3569_v44 }
 0x64c   :  { %3352 = vmatpush3.bf16.msra.mxu0 %v3569_v44  ;;  %v3577_v44 = vld [vmem:[#allocation7 + $0x150] ss:$8 sps:$4 sm:$0xff]  }
 0x6ef   :  { %v3177_v15 = vpop.f32.mrf.mxu0 }
 0x6f1   :  { %v3178_v16 = vpop.f32.mrf.mxu0 }
 0x6f2   :  { %v3179_v17 = vadd.f32 %v3178_v16, %v3177_v15  ;;  %v3583_v15 = vld [vmem:[#allocation7 + $0x130] ss:$8 sps:$4 sm:$0xff]   ;;  %v3586_v16 = vld [vmem:[#allocation7 + $0x120] ss:$8 sps:$4 sm:$0xff]  }
 0x6f3   :  { %v3180_v20 = vpop.f32.mrf.mxu0 }
 0x6f4   :  { %v2017_v22 = vadd.f32 %v3179_v17, %v1885_v19  ;;  %v3591_v17 = vld [vmem:[#allocation7 + $0x114] ss:$8 sps:$4 sm:$0xff]  }
 0x6f5   :  { %v3181_v21 = vpop.f32.mrf.mxu0 }
 0x6f6   :  { %v3182_v23 = vadd.f32 %v3181_v21, %v3180_v20  ;;  %v2031_v43 = vmax.f32 %v2017_v22, 0.0  ;;  %v3592_v20 = vld [vmem:[#allocation7 + $0x100] ss:$8 sps:$4 sm:$0xff]  }
 0x6f7   :  { %v3183_v24 = vpop.f32.mrf.mxu0 }
 0x6f8   :  { %v2020_v25 = vadd.f32 %v3182_v23, %v1885_v19  ;;  %v2047_v52 = vrot.slane %v2031_v43, 1  ;;  %v2035_v26 = vrot.slane %v2031_v43, 7 }
 0x6f9   :  { %v3184_v48 = vpop.f32.mrf.mxu0 }
 0x6fa   :  { %v2032_v46 = vmax.f32 %v2020_v25, 0.0  ;;  %v3185_v29 = vadd.f32 %v3184_v48, %v3183_v24  ;;  %v2107_v24 = vld [vmem:[#allocation10 + $0x11] ss:$0 sm:$0xff] }
 0x6fb   :  { %v3186_v37 = vpop.f32.mrf.mxu0 }
 0x6fc   :  { %v2025_v41 = vadd.f32 %v3185_v29, %v1885_v19  ;;  %v2127_v42 = vpack.c.bf16 %v2032_v46, %v2031_v43  ;;  %v2048_v50 = vrot.slane %v2032_v46, 1  ;;  %v2036_v54 = vrot.slane %v2032_v46, 7 }
 0x6fd   :  { %v3187_v49 = vpop.f32.mrf.mxu0 }
 0x6fe   :  { %v2033_v7 = vmax.f32 %v2025_v41, 0.0  ;;  %v3188_v51 = vadd.f32 %v3187_v49, %v3186_v37  ;;  %2308 = vmatprep.mubr.bf16.mxu1 %v2127_v42  ;;  %v2053_v60 = vsel %vm668_vm0, %v2047_v52, %v2048_v50  ;;  %v2041_v27 = vsel %vm655_vm5, %v2035_v26, %v2036_v54 }
 0x700   :  { %v2049_v9 = vrot.slane %v2033_v7, 1  ;;  %v2028_v53 = vadd.f32 %v3188_v51, %v1885_v19  ;;  %v2037_v59 = vrot.slane %v2033_v7, 7  ;;  %v3589_v19 = vld [vmem:[#allocation7 + $0x110] ss:$8 sps:$4 sm:$0xff]  }
 0x702   :  { %v2034_v10 = vmax.f32 %v2028_v53, 0.0  ;;  %v2052_v55 = vsel %vm668_vm0, %v2048_v50, %v2049_v9  ;;  %v2040_v14 = vsel %vm655_vm5, %v2036_v54, %v2037_v59 }
 0x703   :  { %v2996_v61 = vpack.c.bf16 %v2052_v55, %v2053_v60 }
 0x704   :  { %v2038_v62 = vrot.slane %v2034_v10, 7  ;;  %v2050_v63 = vrot.slane %v2034_v10, 1  ;;  %v2130_v8 = vpack.c.bf16 %v2034_v10, %v2033_v7 }
 0x705   :  { %3353 = vmatprep.mubr.msk.bf16.mxu0 %vm3827_vm4, %v2996_v61 }
 0x706   :  { %v2042_v28 = vsel %vm655_vm5, %v2038_v62, %v2035_v26  ;;  %v2051_v32 = vsel %vm668_vm0, %v2049_v9, %v2050_v63  ;;  %v2054_v0 = vsel %vm668_vm0, %v2050_v63, %v2047_v52  ;;  %v2039_v13 = vsel %vm655_vm5, %v2037_v59, %v2038_v62  ;;  %v3600_v59 = vld [vmem:[#allocation5 + $0x3a8] sm:$0xff]  }
 0x707   :  { %v2990_v3 = vpack.c.bf16 %v2041_v27, %v2042_v28  ;;  %v2999_v4 = vpack.c.bf16 %v2054_v0, %v2051_v32  ;;  %v2993_v47 = vpack.c.bf16 %v2039_v13, %v2040_v14  ;;  %v3604_v13 = vld [vmem:[#allocation5 + $0x398] sm:$0xff]   ;;  %v3605_v14 = vld [vmem:[#allocation5 + $0x3d0] sm:$0xff]  }
 0x709   :  { %2991 = vmatmul.mubr.msk.bf16.vlgmr.msra.gmra.mxu1 %vm3838_vm7, %v2990_v3  ;;  %3354 = vmatmul.mubr.msk.bf16.vlgmr.msra.gmra.mxu0 %vm3851_vm8, %v2999_v4  ;;  %v3596_v3 = vld [vmem:[#allocation5 + $0x3b8] sm:$0xff]   ;;  %v3597_v4 = vld [vmem:[#allocation5 + $0x3f0] sm:$0xff]  }
 0x70a   :  { %2316 = vmatprep.mubr.bf16.mxu1 %v2130_v8  ;;  %2472 = vmatpush1.bf16.msra.mxu1 %v3571_v2  ;;  %v3595_v2 = vld [vmem:[#allocation5 + $0x3f8] sm:$0xff]   ;;  %v3599_v8 = vld [vmem:[#allocation5 + $0x3e8] sm:$0xff]  }
 0x70b   :  { %2473 = vmatprep.subr.bf16.mxu1 %v3576_v5  ;;  %3227 = vmatprep.subr.bf16.mxu0 %v3595_v2  ;;  %v3598_v5 = vld [vmem:[#allocation5 + $0x3b0] sm:$0xff]  }
 0x70c   :  { %3228 = vmatpush3.bf16.msra.mxu0 %v3596_v3 }
 0x70d   :  { %3229 = vmatprep.subr.bf16.mxu0 %v3597_v4 }
 0x70e   :  { %2474 = vmatpush1.bf16.msra.mxu1 %v3574_v11  ;;  %v3601_v11 = vld [vmem:[#allocation5 + $0x3e0] sm:$0xff]  }
 0x70f   :  { %2475 = vmatprep.subr.bf16.mxu1 %v3579_v36  ;;  %v3602_v36 = vld [vmem:[#allocation5 + $0x3a0] sm:$0xff]  }
 0x710   :  { %3230 = vmatpush3.bf16.msra.mxu0 %v3598_v5 }
 0x711   :  { %2994 = vmatmul.mubr.msk.bf16.gmra.mxu1 %vm3864_vm10, %v2993_v47  ;;  %3231 = vmatprep.subr.bf16.mxu0 %v3599_v8  ;;  %v3607_v47 = vld [vmem:[#allocation5 + $0x3c8] sm:$0xff]  }
 0x712   :  { %2476 = vmatpush1.bf16.msra.mxu1 %v3577_v44  ;;  %2503 = vmatprep.mubr.bf16.mxu1 %v3756_v38  ;;  %v3606_v44 = vld [vmem:[#allocation5 + $0x390] sm:$0xff]  }
 0x713   :  { %2477 = vmatprep.subr.bf16.mxu1 %v3582_v1  ;;  %v3608_v1 = vld [vmem:[#allocation5 + $0x388] sm:$0xff]  }
 0x714   :  { %3232 = vmatpush3.bf16.msra.mxu0 %v3600_v59 }
 0x715   :  { %3233 = vmatprep.subr.bf16.mxu0 %v3601_v11 }
 0x716   :  { %2478 = vmatpush1.bf16.msra.mxu1 %v3580_v6  ;;  %v3609_v6 = vld [vmem:[#allocation5 + $0x3c0] sm:$0xff]  }
 0x717   :  { %2479 = vmatprep.subr.bf16.mxu1 %v3585_v31  ;;  %v3610_v31 = vld [vmem:[#allocation5 + $0x380] sm:$0xff]  }
 0x718   :  { %3234 = vmatpush3.bf16.msra.mxu0 %v3602_v36 }
 0x71a   :  { %2480 = vmatpush1.bf16.msra.mxu1 %v3583_v15  ;;  %v2125_v15 = vld [vmem:[#allocation10 + $0x12] ss:$8 sm:$0x3] }
 0x71b   :  { %2481 = vmatprep.subr.bf16.mxu1 %v3588_v30  ;;  %v2384_v30 = vrot.slane %v2125_v15, %v3886_v39 }
 0x71e   :  { %2482 = vmatpush1.bf16.msra.mxu1 %v3586_v16  ;;  %v2388_v16 = vrot.slane %v2125_v15, %v3883_v35 }
 0x71f   :  { %2483 = vmatprep.subr.bf16.mxu1 %v3591_v17 }
 0x722   :  { %2484 = vmatpush1.bf16.msra.mxu1 %v3589_v19 }
 0x723   :  { %2485 = vmatprep.subr.bf16.mxu1 %v3594_v18 }
 0x726   :  { %2486 = vmatpush1.bf16.msra.mxu1 %v3592_v20 }
 0x7c9   :  { %v3205_v21 = vpop.f32.mrf.mxu1  ;;  %v3355_v22 = vpop.f32.mrf.mxu0 }
 0x7cb   :  { %v3206_v23 = vpop.f32.mrf.mxu1  ;;  %v2359_v25 = vpop.f32.mrf.mxu0 }
 0x7cc   :  { %v3207_v48 = vadd.f32 %v3206_v23, %v3205_v21 }
 0x7cd   :  { %v3208_v43 = vpop.f32.mrf.mxu1  ;;  %v3356_v29 = vpop.f32.mrf.mxu0 }
 0x7ce   :  { %v2311_v46 = vadd.f32 %v3207_v48, %v2107_v24 }
 0x7cf   :  { %v3209_v37 = vpop.f32.mrf.mxu1  ;;  %v2362_v7 = vpop.f32.mrf.mxu0 }
 0x7d0   :  { %v3210_v41 = vadd.f32 %v3209_v37, %v3208_v43  ;;  %v2360_v49 = vadd.f32 %v2359_v25, %v2311_v46 }
 0x7d1   :  { %v3211_v42 = vpop.f32.mrf.mxu1 }
 0x7d2   :  { %v2314_v50 = vadd.f32 %v3210_v41, %v2107_v24  ;;  %v2374_v54 = vmax.f32 %v2360_v49, 0.0 }
 0x7d3   :  { %v3212_v51 = vpop.f32.mrf.mxu1 }
 0x7d4   :  { %v2363_v52 = vadd.f32 %v2362_v7, %v2314_v50  ;;  %v3213_v9 = vadd.f32 %v3212_v51, %v3211_v42 }
 0x7d5   :  { %v3214_v53 = vpop.f32.mrf.mxu1 }
 0x7d6   :  { %v2375_v10 = vmax.f32 %v2363_v52, 0.0  ;;  %v2319_v55 = vadd.f32 %v3213_v9, %v2107_v24 }
 0x7d7   :  { %v3215_v60 = vpop.f32.mrf.mxu1 }
 0x7d8   :  { %v2378_v61 = vpack.c.bf16 %v2375_v10, %v2374_v54  ;;  %v3216_v26 = vadd.f32 %v3215_v60, %v3214_v53  ;;  %v2368_v62 = vadd.f32 %v3355_v22, %v2319_v55 }
 0x7da   :  { %v2322_v63 = vadd.f32 %v3216_v26, %v2107_v24  ;;  %2504 = vmatmul.mubr.bf16.vlgmr.msra.gmra.mxu1 %v2378_v61  ;;  %v2376_v28 = vmax.f32 %v2368_v62, 0.0 }
 0x7db   :  { %2513 = vmatprep.mubr.bf16.mxu1 %v3756_v38  ;;  %v3603_v38 = vld [vmem:[#allocation5 + $0x3d8] sm:$0xff]  }
 0x7dc   :  { %v2371_v27 = vadd.f32 %v3356_v29, %v2322_v63  ;;  %3235 = vmatprep.subr.bf16.mxu0 %v3603_v38 }
 0x7dd   :  { %3236 = vmatpush3.bf16.msra.mxu0 %v3604_v13 }
 0x7de   :  { %v2377_v32 = vmax.f32 %v2371_v27, 0.0  ;;  %3237 = vmatprep.subr.bf16.mxu0 %v3605_v14 }
 0x7e0   :  { %v2379_v0 = vpack.c.bf16 %v2377_v32, %v2376_v28 }
 0x7e1   :  { %3238 = vmatpush3.bf16.msra.mxu0 %v3606_v44 }
 0x7e2   :  { %2514 = vmatmul.mubr.bf16.gmra.mxu1 %v2379_v0  ;;  %3239 = vmatprep.subr.bf16.mxu0 %v3607_v47 }
 0x7e5   :  { %3240 = vmatpush3.bf16.msra.mxu0 %v3608_v1 }
 0x7e6   :  { %3241 = vmatprep.subr.bf16.mxu0 %v3609_v6 }
 0x7e9   :  { %3242 = vmatpush3.bf16.msra.mxu0 %v3610_v31 }
 0x89a   :  { %v2505_v17 = vpop.f32.mrf.mxu1 }
 0x89b   :  { %v2506_v19 = vadd.f32 %v2505_v17, %v2384_v30 }
 0x89c   :  { %v2507_v18 = vpop.f32.mrf.mxu1 }
 0x89d   :  { %v2508_v20 = vadd.f32 %v2507_v18, %v2388_v16  ;;  %v2524_v22 = vmax.f32 %v2506_v19, 0.0 }
 0x89e   :  { %v2509_v21 = vpop.f32.mrf.mxu1 }
 0x89f   :  { %v2510_v23 = vadd.f32 %v2509_v21, %v2384_v30  ;;  %v2525_v25 = vmax.f32 %v2508_v20, 0.0  ;;  %v2532_v29 = vadd.f32 %v2524_v22, %v3962_v40 }
 0x8a0   :  { %v2511_v24 = vpop.f32.mrf.mxu1 }
 0x8a1   :  { %v2526_v48 = vmax.f32 %v2510_v23, 0.0  ;;  %v2512_v43 = vadd.f32 %v2511_v24, %v2388_v16  ;;  %v2533_v35 = vadd.f32 %v2525_v25, %v3956_v33 }
 0x8a2   :  { %v2515_v46 = vpop.f32.mrf.mxu1 }
 0x8a3   :  { %v2534_v37 = vadd.f32 %v2526_v48, %v3953_v45  ;;  %v2527_v41 = vmax.f32 %v2512_v43, 0.0  ;;  %v2516_v39 = vadd.f32 %v2515_v46, %v2384_v30 }
 0x8a4   :  { %v2517_v42 = vpop.f32.mrf.mxu1 }
 0x8a5   :  { %v2540_v49 = vadd.f32 %v2534_v37, %v2532_v29  ;;  %v2535_v50 = vadd.f32 %v2527_v41, %v3959_v34  ;;  %v2518_v7 = vadd.f32 %v2517_v42, %v2388_v16  ;;  %v2528_v53 = vmax.f32 %v2516_v39, 0.0  ;;  %v2609_v41 = vld [vmem:[#allocation10 + $0x13] ss:$0 sm:$0xff] }
 0x8a6   :  { %v2519_v51 = vpop.f32.mrf.mxu1 }
 0x8a7   :  { %v2541_v52 = vrot.slane %v2540_v49, 4  ;;  %v2547_v9 = vadd.f32 %v2535_v50, %v2533_v35  ;;  %v2520_v54 = vadd.f32 %v2519_v51, %v2384_v30  ;;  %v2529_v40 = vmax.f32 %v2518_v7, 0.0 }
 0x8a8   :  { %v2521_v10 = vpop.f32.mrf.mxu1  ;;  %v2536_v33 = vadd.f32 %v2528_v53, %v3978_v58 }
 0x8a9   :  { %v2542_v55 = vadd.f32 %v2541_v52, %v2540_v49  ;;  %v2548_v60 = vrot.slane %v2547_v9, 4  ;;  %v2522_v61 = vadd.f32 %v2521_v10, %v2388_v16  ;;  %v2530_v45 = vmax.f32 %v2520_v54, 0.0 }
 0x8aa   :  { %v2537_v32 = vadd.f32 %v2529_v40, %v3972_v56 }
 0x8ab   :  { %v2543_v26 = vrot.slane %v2542_v55, 2  ;;  %v2549_v62 = vadd.f32 %v2548_v60, %v2547_v9  ;;  %v2531_v63 = vmax.f32 %v2522_v61, 0.0  ;;  %v2538_v27 = vadd.f32 %v2530_v45, %v3969_v12 }
 0x8ad   :  { %v2544_v34 = vadd.f32 %v2543_v26, %v2542_v55  ;;  %v2550_v28 = vrot.slane %v2549_v62, 2  ;;  %v2539_v0 = vadd.f32 %v2531_v63, %v3975_v57  ;;  %v2554_v2 = vadd.f32 %v2538_v27, %v2536_v33 }
 0x8af   :  { %v2551_v3 = vadd.f32 %v2550_v28, %v2549_v62  ;;  %v2561_v4 = vadd.f32 %v2539_v0, %v2537_v32  ;;  %v2545_v5 = vrot.slane %v2544_v34, 1  ;;  %v2555_v8 = vrot.slane %v2554_v2, 4 }
 0x8b1   :  { %v2552_v59 = vrot.slane %v2551_v3, 1  ;;  %v2562_v11 = vrot.slane %v2561_v4, 4  ;;  %v2556_v36 = vadd.f32 %v2555_v8, %v2554_v2  ;;  %v2546_v13 = vadd.f32 %v2545_v5, %v2544_v34 }
 0x8b3   :  { %v2563_v38 = vadd.f32 %v2562_v11, %v2561_v4  ;;  %v2557_v14 = vrot.slane %v2556_v36, 2  ;;  %v2553_v44 = vadd.f32 %v2552_v59, %v2551_v3  ;;  %v2569_v1 = vmul.f32 0.0625, %v2546_v13 }
 0x8b5   :  { %v2564_v58 = vrot.slane %v2563_v38, 2  ;;  %v2558_v12 = vadd.f32 %v2557_v14, %v2556_v36  ;;  %v2570_v31 = vmul.f32 0.0625, %v2553_v44  ;;  %v2573_v30 = vpack.c.bf16 %v2569_v1, %v2569_v1 }
 0x8b7   :  { %v2565_v47 = vadd.f32 %v2564_v58, %v2563_v38  ;;  %v2559_v6 = vrot.slane %v2558_v12, 1  ;;  %v2574_v19 = vpack.c.bf16 %v2570_v31, %v2570_v31  ;;  %v2614_v21 = vunpack.c.l.b16 %v2573_v30 }
 0x8b9   :  { %v2566_v56 = vrot.slane %v2565_v47, 1  ;;  %v2560_v57 = vadd.f32 %v2559_v6, %v2558_v12  ;;  %v2615_v23 = vunpack.c.l.b16 %v2574_v19 }
 0x8bb   :  { %v2567_v15 = vadd.f32 %v2566_v56, %v2565_v47  ;;  %v2571_v16 = vmul.f32 0.0625, %v2560_v57 }
 0x8bd   :  { %v2572_v17 = vmul.f32 0.0625, %v2567_v15  ;;  %v2575_v18 = vpack.c.bf16 %v2571_v16, %v2571_v16 }
 0x8bf   :  { %v2576_v20 = vpack.c.bf16 %v2572_v17, %v2572_v17  ;;  %v2616_v22 = vunpack.c.l.b16 %v2575_v18 }
 0x8c1   :  { %v2617_v24 = vunpack.c.l.b16 %v2576_v20  ;;  %v2619_v25 = vsel %vm2618_vm11, %v2616_v22, %v2614_v21 }
 0x8c2   :  { %v2621_v46 = vpack.c.b16 %v2619_v25, %v2619_v25 }
 0x8c3   :  { %v2620_v48 = vsel %vm2618_vm11, %v2617_v24, %v2615_v23 }
 0x8c4   :  { %v2622_v43 = vpack.c.b16 %v2620_v48, %v2620_v48 }
 0x8c6   :  { %2753 = vmatprep.mubr.bf16.mxu0 %v2622_v43 }
 0x8c7   :  { %2754 = vmatmul.mubr.bf16.vlgmr.msra.gmra.mxu0 %v2621_v46 }
 0x987   :  { %v3243_v29 = vpop.f32.mrf.mxu0 }
 0x989   :  { %v3244_v37 = vpop.f32.mrf.mxu0 }
 0x98a   :  { %v3245_v39 = vadd.f32 %v3244_v37, %v3243_v29 }
 0x98b   :  { %v3246_v42 = vpop.f32.mrf.mxu0 }
 0x98c   :  { %v2756_v35 = vadd.f32 %v3245_v39, %v2609_v41 }
 0x98d   :  { %v3247_v49 = vpop.f32.mrf.mxu0 }
 0x98e   :  { %v2762_v50 = vsel %vm2761_vm12, %v2756_v35, -inf }
 0x98f   :  { %2763 = vmax.xlane.f32.xlu0 %v2762_v50 }
 0xa18   :  { %v2764_v7 = vpop.xlane.xlu0 %2763 }
 0xa19   :  { %v2765_v51 = vsub.f32 %v2756_v35, %v2764_v7 }
 0xa1b   :  { %v2766_v52 = vmul.f32 1.442695, %v2765_v51 }
 0xa1d   :  { %3611 = vpow2.f32 %v2766_v52 }
 0xa2a   :  { %v3612_v9 = vpop.eup %3611 }
 0xa2b   :  { %v2768_v53 = vsel %vm2761_vm12, %v3612_v9, 0.0 }
 0xa2c   :  { %2769 = vadd.xlane.f32.xlu0 %v2768_v53 }
 0xab5   :  { %v2770_v54 = vpop.xlane.xlu0 %2769 }
 0xab6   :  { %3613 = vrcp.f32 %v2770_v54 }
 0xac3   :  { %v3614_v10 = vpop.eup %3613 }
 0xac4   :  { %v2772_v55 = vmul.f32 %v3614_v10, %v3612_v9 }
 0xac6   :  { %2773 = vst [vmem:[#allocation11] sm:$0x3] %v2772_v55 }
 0xac7   :  { %3726 = shalt.err (!%p3723_p1)
}
 0xac8   :  { %2783 = dma.vmem_to_hbm [thread:$0]  %s2781_s4, 32, %s4028_s5, [#allocation4]  }
 0xac9   :  { %3741 = dma.done.wait [#allocation4], 32  }
 0xaca   :  { %3742 = vsyncadd [#allocation4], 4294967264 }
 0xacb   :  { %2787 = vsyncpa [#allocation3], 1 }
 0xacc   :  { %2788 = vsyncpa [#allocation6], 1 }
 0xacd   :  { %2789 = vsyncpa [#allocation9], 1 }
 0xace   :  { %2790 = vsyncpa [#allocation4], 1 }

</bundles_post_ra>
